<compile_context>
chip_gen: v7x
topology: tpu7x:2x2x1
jax: 0.10.0
libtpu: 0.0.40
codegen_flags: <defaults>
</compile_context>

<pallas_src>
import functools

import jax
import jax.numpy as jnp
from jax.experimental import pallas as pl
from jax.experimental.pallas import tpu as pltpu


# ------------------------------ helpers -------------------------------------


def _round_up(x, m):
    return ((x + m - 1) // m) * m


def _pad2(x, rows, cols):
    return jnp.pad(x, ((0, rows - x.shape[0]), (0, cols - x.shape[1])))


def _elu(x):
    # ELU with alpha=1 (matches F.elu defaults); exp(min(x,0)) avoids overflow.
    return jnp.where(x > 0, x, jnp.exp(jnp.minimum(x, 0.0)) - 1.0)


# --------------------------- fused Pallas kernel -----------------------------


def fused_forward_kernel(x_ref, adj0_ref, adj1_ref, sample_ref, *refs,
                         out_dim):
    """Entire RobustGCN forward in one kernel.

    refs = (w0, b0, w1, b1, ..., out_ref); layer weights are pre-packed:
      layer 0:  w0 = [Wm | Wv]            (F_pad, 2*H_pad)
      layer i>0: wi = blockdiag(Wm, Wv)   (2*F_pad, 2*O_pad)
      bi = [bm | bv]                      (1, 2*O_pad)

    mean/var and adj0/adj1 stay resident in VMEM for the whole layer loop
    (single kernel invocation -> no HBM round-trips between layers).
    """
    out_ref = refs[-1]
    wb = refs[:-1]
    n_layers = len(wb) // 2

    adj0 = adj0_ref[...]                     # (N, N) bf16
    adj1 = adj1_ref[...]                     # (N, N) bf16
    x = x_ref[...]                           # (N, F_pad) f32

    # ---- initial layer: mean input == var input == x  -> one fused matmul.
    w0 = wb[0][...]                          # (F_pad, 2*H_pad)
    b0 = wb[1][...]                          # (1, 2*H_pad)
    h_pad = w0.shape[1] // 2
    mv = jnp.dot(x, w0, preferred_element_type=jnp.float32) + b0
    mean = _elu(mv[:, :h_pad])
    var = jnp.maximum(mv[:, h_pad:], 0.0)

    # ---- subsequent layers (static Python loop over per-layer weight refs).
    for layer in range(1, n_layers):
        w = wb[2 * layer][...]               # (2*F_pad, 2*O_pad) block-diag
        b = wb[2 * layer + 1][...]           # (1, 2*O_pad)
        o_pad = w.shape[1] // 2

        lhs = jnp.concatenate([mean, var], axis=-1)          # (N, 2*F_pad)
        mv = jnp.dot(lhs, w, preferred_element_type=jnp.float32) + b
        m = _elu(mv[:, :o_pad])
        v = jnp.maximum(mv[:, o_pad:], 0.0) + 1e-6
        att = jnp.exp(-v)
        m = m * att
        v = v * att * att

        # Adjacency propagation: bf16 operands, f32 accumulation on the MXU.
        mean = jnp.dot(adj0, m.astype(jnp.bfloat16),
                       preferred_element_type=jnp.float32)
        var = jnp.dot(adj1, v.astype(jnp.bfloat16),
                      preferred_element_type=jnp.float32)

    # ---- output stage: mean + sample * sqrt(var), masked log_softmax over
    #      the `out_dim` real columns (rest is lane padding).
    logits = mean + sample_ref[...] * jnp.sqrt(var)
    col = jax.lax.broadcasted_iota(jnp.int32, logits.shape, 1)
    valid = col < out_dim
    masked = jnp.where(valid, logits, jnp.float32(-1e30))
    mx = jnp.max(masked, axis=-1, keepdims=True)
    shifted = masked - mx
    lse = jnp.log(jnp.sum(jnp.exp(shifted), axis=-1, keepdims=True))
    out_ref[...] = jnp.where(valid, shifted - lse, 0.0)


# ------------------------------ model glue -----------------------------------


def gcn_norm_pair(adj):
    """Single-pass computation of both normalized adjacencies, as bf16.

    adj0 = D^-0.5 (A+I_diag) D^-0.5 ; adj1 = D^-1 (A+I_diag) D^-1
    """
    n = adj.shape[0]
    adj = adj.at[jnp.diag_indices(n)].set(1.0)       # fill_diag(A, 1.0)
    deg = jnp.sum(adj, axis=1)
    d_half = deg ** -0.5
    d_one = deg ** -1.0
    d_half = jnp.where(jnp.isinf(d_half), 0.0, d_half)
    d_one = jnp.where(jnp.isinf(d_one), 0.0, d_one)
    adj0 = (adj * d_half[:, None] * d_half[None, :]).astype(jnp.bfloat16)
    adj1 = (adj * d_one[:, None] * d_one[None, :]).astype(jnp.bfloat16)
    return adj0, adj1


def init_params(key, input_dim, hidden_dim, output_dim, num_layers):
    """Deterministic synthetic parameters for every RobustGCNConv layer.

    NOTE: faithfully mirrors the (quirky) original constructor: every layer's
    Linear has `input_dim` as its fan-in, so hidden_dim[0] must equal input_dim
    for the forward pass shapes to be consistent (same constraint as PyTorch).
    """
    dims_out = [hidden_dim[0]]
    for i in range(num_layers - 2):
        dims_out.append(hidden_dim[i + 1])
    dims_out.append(output_dim)

    params = []
    for out_dim in dims_out:
        key, k1, k2, k3, k4 = jax.random.split(key, 5)
        bound = 1.0 / jnp.sqrt(jnp.float32(input_dim))
        wm = jax.random.uniform(k1, (input_dim, out_dim), jnp.float32,
                                -bound, bound)
        bm = jax.random.uniform(k2, (1, out_dim), jnp.float32, -bound, bound)
        wv = jax.random.uniform(k3, (input_dim, out_dim), jnp.float32,
                                -bound, bound)
        bv = jax.random.uniform(k4, (1, out_dim), jnp.float32, -bound, bound)
        params.append((wm, bm, wv, bv))
    return params


def pack_params(params, f_pad):
    """Pad weights to 128-lane multiples and fuse mean/var linears per layer."""
    packed = []
    for i, (wm, bm, wv, bv) in enumerate(params):
        out_dim = wm.shape[1]
        o_pad = _round_up(out_dim, 128)
        wm_p = _pad2(wm, f_pad, o_pad)
        wv_p = _pad2(wv, f_pad, o_pad)
        b_cat = jnp.concatenate(
            [_pad2(bm, 1, o_pad), _pad2(bv, 1, o_pad)], axis=1)
        if i == 0:
            # initial layer: same input for mean/var -> output-concat weights.
            w_cat = jnp.concatenate([wm_p, wv_p], axis=1)
        else:
            # robust layer: different inputs -> block-diagonal packing so one
            # matmul on concat([mean, var]) computes both branches.
            w_cat = jnp.zeros((2 * f_pad, 2 * o_pad), jnp.float32)
            w_cat = w_cat.at[:f_pad, :o_pad].set(wm_p)
            w_cat = w_cat.at[f_pad:, o_pad:].set(wv_p)
        packed += [w_cat, b_cat]
    return packed


def robust_gcn_forward(X, A, params, sample):
    n, f = X.shape
    out_dim = params[-1][0].shape[1]

    n_pad = _round_up(n, 128)
    f_pad = _round_up(f, 128)
    o_pad = _round_up(out_dim, 128)

    adj0, adj1 = gcn_norm_pair(A)
    adj0 = _pad2(adj0, n_pad, n_pad)
    adj1 = _pad2(adj1, n_pad, n_pad)
    x_p = _pad2(X, n_pad, f_pad)
    s_p = _pad2(sample, n_pad, o_pad)
    packed = pack_params(params, f_pad)

    kernel = functools.partial(fused_forward_kernel, out_dim=out_dim)
    n_inputs = 4 + len(packed)
    vmem_spec = pl.BlockSpec(memory_space=pltpu.MemorySpace.VMEM)

    out = pl.pallas_call(
        kernel,
        out_shape=jax.ShapeDtypeStruct((n_pad, o_pad), jnp.float32),
        in_specs=[vmem_spec] * n_inputs,
        out_specs=vmem_spec,
        compiler_params=pltpu.CompilerParams(
            vmem_limit_bytes=48 * 1024 * 1024),
    )(x_p, adj0, adj1, s_p, *packed)

    return out[:n, :out_dim]


# ---------------------------------- main --------------------------------------

if __name__ == "__main__":
    N = 128            # number of graph nodes
    INPUT_DIM = 32
    HIDDEN_DIM = [32]  # must equal INPUT_DIM (mirrors original constructor)
    OUTPUT_DIM = 16
    NUM_LAYERS = 2

    key = jax.random.PRNGKey(0)
    kx, ka, ks, kp = jax.random.split(key, 4)

    X = jax.random.normal(kx, (N, INPUT_DIM), jnp.float32)
    A = (jax.random.uniform(ka, (N, N)) > 0.9).astype(jnp.float32)
    sample = jax.random.normal(ks, (N, OUTPUT_DIM), jnp.float32)

    params = init_params(kp, INPUT_DIM, HIDDEN_DIM, OUTPUT_DIM, NUM_LAYERS)

    out = robust_gcn_forward(X, A, params, sample)
    out = jax.block_until_ready(out)

    assert out.shape == (N, OUTPUT_DIM)
    assert bool(jnp.all(jnp.isfinite(out)))
    print("KERNEL_OK")
</pallas_src>

<mosaic_0001>
module attributes {stable_mosaic.version = 11 : i64} {
  func.func @fused_forward_kernel(%arg0: memref<128x128xf32, #tpu.memory_space<vmem>>, %arg1: memref<128x128xbf16, #tpu.memory_space<vmem>>, %arg2: memref<128x128xbf16, #tpu.memory_space<vmem>>, %arg3: memref<128x128xf32, #tpu.memory_space<vmem>>, %arg4: memref<128x256xf32, #tpu.memory_space<vmem>>, %arg5: memref<1x256xf32, #tpu.memory_space<vmem>>, %arg6: memref<256x256xf32, #tpu.memory_space<vmem>>, %arg7: memref<1x256xf32, #tpu.memory_space<vmem>>, %arg8: memref<128x128xf32, #tpu.memory_space<vmem>>) attributes {dimension_semantics = [], scalar_prefetch = 0 : i64, scratch_operands = 0 : i64, tpu.core_type = #tpu.core_type<tc>} {
    %c0 = arith.constant 0 : index
    %c0_0 = arith.constant 0 : index
    %0 = vector.load %arg1[%c0, %c0_0] : memref<128x128xbf16, #tpu.memory_space<vmem>>, vector<128x128xbf16>
    %c0_1 = arith.constant 0 : index
    %c0_2 = arith.constant 0 : index
    %1 = vector.load %arg2[%c0_1, %c0_2] : memref<128x128xbf16, #tpu.memory_space<vmem>>, vector<128x128xbf16>
    %c0_3 = arith.constant 0 : index
    %c0_4 = arith.constant 0 : index
    %2 = vector.load %arg0[%c0_3, %c0_4] : memref<128x128xf32, #tpu.memory_space<vmem>>, vector<128x128xf32>
    %c0_5 = arith.constant 0 : index
    %c0_6 = arith.constant 0 : index
    %3 = vector.load %arg4[%c0_5, %c0_6] : memref<128x256xf32, #tpu.memory_space<vmem>>, vector<128x256xf32>
    %c0_7 = arith.constant 0 : index
    %c0_8 = arith.constant 0 : index
    %4 = vector.load %arg5[%c0_7, %c0_8] : memref<1x256xf32, #tpu.memory_space<vmem>>, vector<1x256xf32>
    %cst = arith.constant dense<0.000000e+00> : vector<128x256xf32>
    %5 = tpu.matmul %2, %3, %cst {dimension_numbers = #tpu.dot_dimension_numbers<[1], [0], [0], [1], [0, 0, 1, 1], [], []>} : vector<128x128xf32>, vector<128x256xf32>, vector<128x256xf32> -> vector<128x256xf32>
    %6 = vector.broadcast %4 : vector<1x256xf32> to vector<128x256xf32>
    %7 = arith.addf %5, %6 : vector<128x256xf32>
    %8 = vector.extract_strided_slice %7 {offsets = [0, 0], sizes = [128, 128], strides = [1, 1]} : vector<128x256xf32> to vector<128x128xf32>
    %cst_9 = arith.constant 0.000000e+00 : f32
    %9 = vector.broadcast %cst_9 : f32 to vector<128x128xf32>
    %10 = arith.cmpf ogt, %8, %9 : vector<128x128xf32>
    %cst_10 = arith.constant 0.000000e+00 : f32
    %11 = vector.broadcast %cst_10 : f32 to vector<128x128xf32>
    %12 = arith.minimumf %8, %11 : vector<128x128xf32>
    %13 = math.exp %12 : vector<128x128xf32>
    %cst_11 = arith.constant 1.000000e+00 : f32
    %14 = vector.broadcast %cst_11 : f32 to vector<128x128xf32>
    %15 = arith.subf %13, %14 : vector<128x128xf32>
    %16 = arith.select %10, %8, %15 : vector<128x128xi1>, vector<128x128xf32>
    %17 = vector.extract_strided_slice %7 {offsets = [0, 128], sizes = [128, 128], strides = [1, 1]} : vector<128x256xf32> to vector<128x128xf32>
    %cst_12 = arith.constant 0.000000e+00 : f32
    %18 = vector.broadcast %cst_12 : f32 to vector<128x128xf32>
    %19 = arith.maximumf %17, %18 : vector<128x128xf32>
    %c0_13 = arith.constant 0 : index
    %c0_14 = arith.constant 0 : index
    %20 = vector.load %arg6[%c0_13, %c0_14] : memref<256x256xf32, #tpu.memory_space<vmem>>, vector<256x256xf32>
    %c0_15 = arith.constant 0 : index
    %c0_16 = arith.constant 0 : index
    %21 = vector.load %arg7[%c0_15, %c0_16] : memref<1x256xf32, #tpu.memory_space<vmem>>, vector<1x256xf32>
    %22 = tpu.concatenate %16, %19 in 1 : vector<128x128xf32>, vector<128x128xf32> -> vector<128x256xf32>
    %cst_17 = arith.constant dense<0.000000e+00> : vector<128x256xf32>
    %23 = tpu.matmul %22, %20, %cst_17 {dimension_numbers = #tpu.dot_dimension_numbers<[1], [0], [0], [1], [0, 0, 1, 1], [], []>} : vector<128x256xf32>, vector<256x256xf32>, vector<128x256xf32> -> vector<128x256xf32>
    %24 = vector.broadcast %21 : vector<1x256xf32> to vector<128x256xf32>
    %25 = arith.addf %23, %24 : vector<128x256xf32>
    %26 = vector.extract_strided_slice %25 {offsets = [0, 0], sizes = [128, 128], strides = [1, 1]} : vector<128x256xf32> to vector<128x128xf32>
    %cst_18 = arith.constant 0.000000e+00 : f32
    %27 = vector.broadcast %cst_18 : f32 to vector<128x128xf32>
    %28 = arith.cmpf ogt, %26, %27 : vector<128x128xf32>
    %cst_19 = arith.constant 0.000000e+00 : f32
    %29 = vector.broadcast %cst_19 : f32 to vector<128x128xf32>
    %30 = arith.minimumf %26, %29 : vector<128x128xf32>
    %31 = math.exp %30 : vector<128x128xf32>
    %cst_20 = arith.constant 1.000000e+00 : f32
    %32 = vector.broadcast %cst_20 : f32 to vector<128x128xf32>
    %33 = arith.subf %31, %32 : vector<128x128xf32>
    %34 = arith.select %28, %26, %33 : vector<128x128xi1>, vector<128x128xf32>
    %35 = vector.extract_strided_slice %25 {offsets = [0, 128], sizes = [128, 128], strides = [1, 1]} : vector<128x256xf32> to vector<128x128xf32>
    %cst_21 = arith.constant 0.000000e+00 : f32
    %36 = vector.broadcast %cst_21 : f32 to vector<128x128xf32>
    %37 = arith.maximumf %35, %36 : vector<128x128xf32>
    %cst_22 = arith.constant 9.99999997E-7 : f32
    %38 = vector.broadcast %cst_22 : f32 to vector<128x128xf32>
    %39 = arith.addf %37, %38 : vector<128x128xf32>
    %cst_23 = arith.constant 0.000000e+00 : f32
    %40 = vector.broadcast %cst_23 : f32 to vector<128x128xf32>
    %41 = arith.subf %40, %39 : vector<128x128xf32>
    %42 = math.exp %41 : vector<128x128xf32>
    %43 = arith.mulf %34, %42 : vector<128x128xf32>
    %44 = arith.mulf %39, %42 : vector<128x128xf32>
    %45 = arith.mulf %44, %42 : vector<128x128xf32>
    %46 = arith.truncf %43 : vector<128x128xf32> to vector<128x128xbf16>
    %cst_24 = arith.constant dense<0.000000e+00> : vector<128x128xf32>
    %47 = tpu.matmul %0, %46, %cst_24 {dimension_numbers = #tpu.dot_dimension_numbers<[1], [0], [0], [1], [0, 0, 1, 1], [], []>} : vector<128x128xbf16>, vector<128x128xbf16>, vector<128x128xf32> -> vector<128x128xf32>
    %48 = arith.truncf %45 : vector<128x128xf32> to vector<128x128xbf16>
    %cst_25 = arith.constant dense<0.000000e+00> : vector<128x128xf32>
    %49 = tpu.matmul %1, %48, %cst_25 {dimension_numbers = #tpu.dot_dimension_numbers<[1], [0], [0], [1], [0, 0, 1, 1], [], []>} : vector<128x128xbf16>, vector<128x128xbf16>, vector<128x128xf32> -> vector<128x128xf32>
    %c0_26 = arith.constant 0 : index
    %c0_27 = arith.constant 0 : index
    %50 = vector.load %arg3[%c0_26, %c0_27] : memref<128x128xf32, #tpu.memory_space<vmem>>, vector<128x128xf32>
    %51 = math.sqrt %49 : vector<128x128xf32>
    %52 = arith.mulf %50, %51 : vector<128x128xf32>
    %53 = arith.addf %47, %52 : vector<128x128xf32>
    %54 = tpu.iota {dimensions = array<i32: 1>} : vector<128x128xi32>
    %c16_i32 = arith.constant 16 : i32
    %55 = vector.broadcast %c16_i32 : i32 to vector<128x128xi32>
    %56 = arith.cmpi slt, %54, %55 : vector<128x128xi32>
    %cst_28 = arith.constant -1.000000e+30 : f32
    %57 = vector.broadcast %cst_28 : f32 to vector<128x128xf32>
    %58 = arith.select %56, %53, %57 : vector<128x128xi1>, vector<128x128xf32>
    %cst_29 = arith.constant dense<0xFF800000> : vector<128xf32>
    %59 = vector.multi_reduction <maximumf>, %58, %cst_29 [1] : vector<128x128xf32> to vector<128xf32>
    %60 = vector.shape_cast %59 : vector<128xf32> to vector<128x1xf32>
    %61 = vector.broadcast %60 : vector<128x1xf32> to vector<128x128xf32>
    %62 = arith.subf %58, %61 : vector<128x128xf32>
    %63 = math.exp %62 : vector<128x128xf32>
    %cst_30 = arith.constant dense<0.000000e+00> : vector<128xf32>
    %64 = vector.multi_reduction <add>, %63, %cst_30 [1] : vector<128x128xf32> to vector<128xf32>
    %65 = vector.shape_cast %64 : vector<128xf32> to vector<128x1xf32>
    %66 = math.log %65 : vector<128x1xf32>
    %67 = vector.broadcast %66 : vector<128x1xf32> to vector<128x128xf32>
    %68 = arith.subf %62, %67 : vector<128x128xf32>
    %cst_31 = arith.constant 0.000000e+00 : f32
    %69 = vector.broadcast %cst_31 : f32 to vector<128x128xf32>
    %70 = arith.select %56, %68, %69 : vector<128x128xi1>, vector<128x128xf32>
    %c0_32 = arith.constant 0 : index
    %c0_33 = arith.constant 0 : index
    %71 = vector.load %arg8[%c0_32, %c0_33] : memref<128x128xf32, #tpu.memory_space<vmem>>, vector<128x128xf32>
    tpu.vector_store %arg8[%c0_32, %c0_33], %70 {strides = array<i32>} : memref<128x128xf32, #tpu.memory_space<vmem>>, vector<128x128xf32>,
    return
  }
}

</mosaic_0001>

<bundles_post_ra>
// kernel: tpu_custom_call.1
= control target key start
LH: loop header
LB: loop body
LE: loop exit
PB: predicated region body
PF: predicated region fallthrough
CT: control target
= control target key end

     0   :  { %13 = vsyncpa [#allocation3], 0  ;;  %s3139_s0 = inlined_call_operand.hbm [shape: f32[128,128], index: 0, kind: input, shape index: {}]   ;;  %s3140_s1 = inlined_call_operand.hbm [shape: bf16[128,128], index: 1, kind: input, shape index: {}]   ;;  %s3141_s2 = inlined_call_operand.hbm [shape: bf16[128,128], index: 2, kind: input, shape index: {}]   ;;  %s3142_s3 = inlined_call_operand.hbm [shape: f32[128,128], index: 3, kind: input, shape index: {}]   ;;  %s3143_s4 = inlined_call_operand.hbm [shape: f32[128,256], index: 4, kind: input, shape index: {}]   ;;  %s3144_s5 = inlined_call_operand.vmem [shape: f32[1,256], index: 5, kind: input, shape index: {}]   ;;  %s3145_s6 = inlined_call_operand.hbm [shape: f32[256,256], index: 6, kind: input, shape index: {}]   ;;  %s3146_s7 = inlined_call_operand.vmem [shape: f32[1,256], index: 7, kind: input, shape index: {}]   ;;  %s3147_s8 = inlined_call_operand.hbm [shape: f32[128,128], index: 8, kind: output, shape index: {}]  }
   0x1   :  { %14 = vsyncpa [#allocation6], 0 }
   0x2   :  { %15 = vsyncpa [#allocation9], 0 }
   0x3   :  { %16 = vsyncpa [#allocation12], 0 }
   0x4   :  { %17 = vsyncpa [#allocation4], 0  ;;  %s2262_s27 = smov [#allocation5]   ;;  %s2098_s9 = scalar_lea.hbm %s3140_s1, 1024 }
   0x5   :  { %s35_s28 = sshll.u32 %s2262_s27, 4  ;;  %p2099_p0 = scmp.ne.s32.totalorder %s3140_s1, %s2098_s9  ;;  %s36_s28 = int_to_ptr.vmem [resolvable:$true] %s35_s28 }
   0x6   :  { %p2102_p1 = scmp.lt.u32.totalorder %s2098_s9, %s3140_s1 }
   0x8   :  { %p2104_p2 = pnand %p2102_p1, %p2099_p0 }
   0xa   :  { %2107 = shalt.err (!%p2104_p2)
}
   0xb   :  { %s2108_s14 = scalar_lea.vmem %s36_s28, 1024  ;;  %p2113_p4 = scmp.lt.s32.totalorder %s36_s28, %s36_s28 }
   0xc   :  { %p2109_p3 = scmp.ne.s32.totalorder %s36_s28, %s2108_s14  ;;  %p2114_p5 = scmp.lt.s32.totalorder %s2108_s14, %s2108_s14 }
   0xe   :  { %p2115_p6 = por %p2114_p5, %p2113_p4 }
  0x10   :  { %p2116_p7 = pnand %p2115_p6, %p2109_p3 }
  0x12   :  { %2119 = shalt.err (!%p2116_p7)
}
  0x13   :  { %s2263_s15 = smov 64   ;;  %s2264_s16 = smov 4  }
  0x14   :  { %41 = dma.hbm_to_vmem [thread:$0]  %s3140_s1, 1024, %s36_s28, [#allocation6], %s2263_s15, %s2263_s15, %s2264_s16  }
  0x15   :  { %s2265_s19 = smov [#allocation8]   ;;  %s2266_s21 = smov [#allocation2]  }
  0x16   :  { %s59_s20 = sshll.u32 %s2265_s19, 4  ;;  %s23_s22 = sshll.u32 %s2266_s21, 4  ;;  %s60_s20 = int_to_ptr.vmem [resolvable:$true] %s59_s20  ;;  %s24_s22 = int_to_ptr.vmem [resolvable:$true] %s23_s22 }
  0x17   :  { %s2120_s25 = scalar_lea.hbm %s3142_s3, 2048 }
  0x18   :  { %p2121_p8 = scmp.ne.s32.totalorder %s3142_s3, %s2120_s25  ;;  %p2124_p9 = scmp.lt.u32.totalorder %s2120_s25, %s3142_s3 }
  0x1a   :  { %p2126_p10 = pnand %p2124_p9, %p2121_p8 }
  0x1c   :  { %2129 = shalt.err (!%p2126_p10)
}
  0x1d   :  { %s2130_s1 = scalar_lea.vmem %s60_s20, 2048  ;;  %p2135_p12 = scmp.lt.s32.totalorder %s60_s20, %s60_s20 }
  0x1e   :  { %p2131_p11 = scmp.ne.s32.totalorder %s60_s20, %s2130_s1  ;;  %p2136_p13 = scmp.lt.s32.totalorder %s2130_s1, %s2130_s1 }
  0x20   :  { %p2137_p0 = por %p2136_p13, %p2135_p12 }
  0x22   :  { %p2138_p1 = pnand %p2137_p0, %p2131_p11 }
  0x24   :  { %2141 = shalt.err (!%p2138_p1)
}
  0x25   :  { %s2267_s28 = smov 128   ;;  %s2268_s9 = smov 8  }
  0x26   :  { %65 = dma.hbm_to_vmem [thread:$0]  %s3142_s3, 2048, %s60_s20, [#allocation9], %s2267_s28, %s2267_s28, %s2268_s9  }
  0x27   :  { %s2142_s14 = scalar_lea.hbm %s3139_s0, 2048 }
  0x28   :  { %p2143_p2 = scmp.ne.s32.totalorder %s3139_s0, %s2142_s14  ;;  %p2146_p3 = scmp.lt.u32.totalorder %s2142_s14, %s3139_s0 }
  0x2a   :  { %p2148_p4 = pnand %p2146_p3, %p2143_p2 }
  0x2c   :  { %2151 = shalt.err (!%p2148_p4)
}
  0x2d   :  { %s2152_s23 = scalar_lea.vmem %s24_s22, 2048  ;;  %p2157_p6 = scmp.lt.s32.totalorder %s24_s22, %s24_s22 }
  0x2e   :  { %p2153_p5 = scmp.ne.s32.totalorder %s24_s22, %s2152_s23  ;;  %p2158_p7 = scmp.lt.s32.totalorder %s2152_s23, %s2152_s23 }
  0x30   :  { %p2159_p8 = por %p2158_p7, %p2157_p6 }
  0x32   :  { %p2160_p9 = pnand %p2159_p8, %p2153_p5 }
  0x34   :  { %2163 = shalt.err (!%p2160_p9)
}
  0x35   :  { %29 = dma.hbm_to_vmem [thread:$0]  %s3139_s0, 2048, %s24_s22, [#allocation3], %s2267_s28, %s2267_s28, %s2268_s9  }
  0x36   :  { %s2269_s24 = smov [#allocation7]   ;;  %s2270_s26 = smov [#allocation10]  }
  0x37   :  { %s47_s25 = sshll.u32 %s2269_s24, 4  ;;  %s71_s27 = sshll.u32 %s2270_s26, 4  ;;  %s48_s25 = int_to_ptr.vmem [resolvable:$true] %s47_s25  ;;  %s72_s27 = int_to_ptr.vmem [resolvable:$true] %s71_s27 }
  0x38   :  { %s2164_s1 = scalar_lea.hbm %s3141_s2, 1024 }
  0x39   :  { %p2165_p10 = scmp.ne.s32.totalorder %s3141_s2, %s2164_s1  ;;  %p2168_p11 = scmp.lt.u32.totalorder %s2164_s1, %s3141_s2 }
  0x3b   :  { %p2170_p12 = pnand %p2168_p11, %p2165_p10 }
  0x3d   :  { %2173 = shalt.err (!%p2170_p12)
}
  0x3e   :  { %s2174_s0 = scalar_lea.vmem %s48_s25, 1024  ;;  %p2179_p0 = scmp.lt.s32.totalorder %s48_s25, %s48_s25 }
  0x3f   :  { %p2175_p13 = scmp.ne.s32.totalorder %s48_s25, %s2174_s0  ;;  %p2180_p1 = scmp.lt.s32.totalorder %s2174_s0, %s2174_s0 }
  0x41   :  { %p2181_p2 = por %p2180_p1, %p2179_p0 }
  0x43   :  { %p2182_p3 = pnand %p2181_p2, %p2175_p13 }
  0x45   :  { %2185 = shalt.err (!%p2182_p3)
}
  0x46   :  { %53 = dma.hbm_to_vmem [thread:$0]  %s3141_s2, 1024, %s48_s25, [#allocation6], %s2263_s15, %s2263_s15, %s2264_s16  }
  0x47   :  { %s2186_s19 = scalar_lea.hbm %s3143_s4, 4096 }
  0x48   :  { %p2187_p4 = scmp.ne.s32.totalorder %s3143_s4, %s2186_s19  ;;  %p2190_p5 = scmp.lt.u32.totalorder %s2186_s19, %s3143_s4 }
  0x4a   :  { %p2192_p6 = pnand %p2190_p5, %p2187_p4 }
  0x4c   :  { %2195 = shalt.err (!%p2192_p6)
}
  0x4d   :  { %s2196_s24 = scalar_lea.vmem %s72_s27, 4096  ;;  %p2201_p8 = scmp.lt.s32.totalorder %s72_s27, %s72_s27 }
  0x4e   :  { %p2197_p7 = scmp.ne.s32.totalorder %s72_s27, %s2196_s24  ;;  %p2202_p9 = scmp.lt.s32.totalorder %s2196_s24, %s2196_s24 }
  0x50   :  { %p2203_p10 = por %p2202_p9, %p2201_p8 }
  0x52   :  { %p2204_p11 = pnand %p2203_p10, %p2197_p7 }
  0x54   :  { %2207 = shalt.err (!%p2204_p11)
}
  0x55   :  { %s2271_s2 = smov 256   ;;  %s2272_s15 = smov 16  }
  0x56   :  { %77 = dma.hbm_to_vmem [thread:$0]  %s3143_s4, 4096, %s72_s27, [#allocation9], %s2271_s2, %s2271_s2, %s2272_s15  }
  0x57   :  { %s2273_s26 = smov [#allocation11]   ;;  %s2208_s10 = scalar_lea.hbm %s3145_s6, 8192 }
  0x58   :  { %s85_s29 = sshll.u32 %s2273_s26, 4  ;;  %p2209_p12 = scmp.ne.s32.totalorder %s3145_s6, %s2208_s10  ;;  %s86_s29 = int_to_ptr.vmem [resolvable:$true] %s85_s29 }
  0x59   :  { %p2212_p13 = scmp.lt.u32.totalorder %s2208_s10, %s3145_s6 }
  0x5b   :  { %p2214_p0 = pnand %p2212_p13, %p2209_p12 }
  0x5d   :  { %2217 = shalt.err (!%p2214_p0)
}
  0x5e   :  { %s2218_s22 = scalar_lea.vmem %s86_s29, 8192  ;;  %p2223_p2 = scmp.lt.s32.totalorder %s86_s29, %s86_s29 }
  0x5f   :  { %p2219_p1 = scmp.ne.s32.totalorder %s86_s29, %s2218_s22  ;;  %p2224_p3 = scmp.lt.s32.totalorder %s2218_s22, %s2218_s22 }
  0x61   :  { %p2225_p4 = por %p2224_p3, %p2223_p2 }
  0x63   :  { %p2226_p5 = pnand %p2225_p4, %p2219_p1 }
  0x65   :  { %2229 = shalt.err (!%p2226_p5)
}
  0x66   :  { %91 = dma.hbm_to_vmem [thread:$0]  %s3145_s6, 8192, %s86_s29, [#allocation12], %s2271_s2, %s2271_s2, %s2272_s15  }
  0x67   :  { %2252 = dma.done.wait [#allocation3], 2048  }
  0x68   :  { %2253 = vsyncadd [#allocation3], 4294965248 }
  0x69   :  { %2254 = dma.done.wait [#allocation6], 2048  }
  0x6a   :  { %2255 = vsyncadd [#allocation6], 4294965248 }
  0x6b   :  { %2256 = dma.done.wait [#allocation9], 6144  }
  0x6c   :  { %2257 = vsyncadd [#allocation9], 4294961152 }
  0x6d   :  { %2258 = dma.done.wait [#allocation12], 8192  }
  0x6e   :  { %2259 = vsyncadd [#allocation12], 4294959104  ;;  %v2274_v0 = vmov 0.0   ;;  %v162_v1 = vld [vmem:[#allocation10 + $0x8] sm:$0xff]  ;;  %v164_v2 = vld [vmem:[#allocation10 + $0x18] sm:$0xff] }
  0x6f   :  { %269 = vmatprep.mubr.f32.mxu0 %v2274_v0  ;;  %v161_v3 = vld [vmem:[#allocation10] sm:$0xff]  ;;  %v1764_v4 = vpack.c.bf16 %v164_v2, %v162_v1  ;;  %v163_v5 = vld [vmem:[#allocation10 + $0x10] sm:$0xff]  ;;  %v166_v6 = vld [vmem:[#allocation10 + $0x28] sm:$0xff] }
  0x70   :  { %v168_v7 = vld [vmem:[#allocation10 + $0x38] sm:$0xff]  ;;  %v1766_v8 = vpack.c.bf16 %v163_v5, %v161_v3  ;;  %v165_v10 = vld [vmem:[#allocation10 + $0x20] sm:$0xff]  ;;  %v167_v11 = vld [vmem:[#allocation10 + $0x30] sm:$0xff] }
  0x71   :  { %v1768_v9 = vpack.c.bf16 %v168_v7, %v166_v6  ;;  %v170_v12 = vld [vmem:[#allocation10 + $0x48] sm:$0xff]  ;;  %1765 = vmatprep.subr.bf16.mxu0 %v1764_v4  ;;  %v172_v13 = vld [vmem:[#allocation10 + $0x58] sm:$0xff]  ;;  %v1770_v14 = vpack.c.bf16 %v167_v11, %v165_v10  ;;  %v169_v16 = vld [vmem:[#allocation10 + $0x40] sm:$0xff] }
  0x72   :  { %1767 = vmatpush1.bf16.msra.mxu0 %v1766_v8  ;;  %v1772_v15 = vpack.c.bf16 %v172_v13, %v170_v12  ;;  %v171_v17 = vld [vmem:[#allocation10 + $0x50] sm:$0xff]  ;;  %v174_v18 = vld [vmem:[#allocation10 + $0x68] sm:$0xff]  ;;  %v176_v19 = vld [vmem:[#allocation10 + $0x78] sm:$0xff] }
  0x73   :  { %1769 = vmatprep.subr.bf16.mxu0 %v1768_v9  ;;  %v1774_v20 = vpack.c.bf16 %v171_v17, %v169_v16  ;;  %v1776_v21 = vpack.c.bf16 %v176_v19, %v174_v18  ;;  %v173_v22 = vld [vmem:[#allocation10 + $0x60] sm:$0xff]  ;;  %v175_v23 = vld [vmem:[#allocation10 + $0x70] sm:$0xff]  ;;  %v178_v24 = vld [vmem:[#allocation10 + $0x88] sm:$0xff] }
  0x74   :  { %v180_v25 = vld [vmem:[#allocation10 + $0x98] sm:$0xff]  ;;  %v1778_v26 = vpack.c.bf16 %v175_v23, %v173_v22  ;;  %v177_v28 = vld [vmem:[#allocation10 + $0x80] sm:$0xff]  ;;  %v179_v29 = vld [vmem:[#allocation10 + $0x90] sm:$0xff] }
  0x75   :  { %v1780_v27 = vpack.c.bf16 %v180_v25, %v178_v24  ;;  %v182_v30 = vld [vmem:[#allocation10 + $0xa8] sm:$0xff]  ;;  %v184_v31 = vld [vmem:[#allocation10 + $0xb8] sm:$0xff]  ;;  %v181_v32 = vld [vmem:[#allocation10 + $0xa0] sm:$0xff]  ;;  %v1782_v34 = vpack.c.bf16 %v179_v29, %v177_v28 }
  0x76   :  { %1771 = vmatpush1.bf16.msra.mxu0 %v1770_v14  ;;  %v183_v33 = vld [vmem:[#allocation10 + $0xb0] sm:$0xff]  ;;  %v186_v35 = vld [vmem:[#allocation10 + $0xc8] sm:$0xff]  ;;  %v188_v36 = vld [vmem:[#allocation10 + $0xd8] sm:$0xff]  ;;  %v1784_v40 = vpack.c.bf16 %v184_v31, %v182_v30 }
  0x77   :  { %1773 = vmatprep.subr.bf16.mxu0 %v1772_v15  ;;  %v479_v37 = vld [vmem:[#allocation11 + $0x8] sm:$0xff]  ;;  %v481_v38 = vld [vmem:[#allocation11 + $0x18] sm:$0xff]  ;;  %v478_v39 = vld [vmem:[#allocation11] sm:$0xff]  ;;  %v1786_v51 = vpack.c.bf16 %v183_v33, %v181_v32  ;;  %v1788_v55 = vpack.c.bf16 %v188_v36, %v186_v35 }
  0x78   :  { %v1796_v41 = vpack.c.bf16 %v481_v38, %v479_v37  ;;  %v480_v42 = vld [vmem:[#allocation11 + $0x10] sm:$0xff]  ;;  %v483_v43 = vld [vmem:[#allocation11 + $0x28] sm:$0xff]  ;;  %v485_v44 = vld [vmem:[#allocation11 + $0x38] sm:$0xff] }
  0x79   :  { %v1798_v45 = vpack.c.bf16 %v480_v42, %v478_v39  ;;  %v1800_v46 = vpack.c.bf16 %v485_v44, %v483_v43  ;;  %v482_v47 = vld [vmem:[#allocation11 + $0x20] sm:$0xff]  ;;  %v484_v48 = vld [vmem:[#allocation11 + $0x30] sm:$0xff]  ;;  %v487_v49 = vld [vmem:[#allocation11 + $0x48] sm:$0xff] }
  0x7a   :  { %1775 = vmatpush1.bf16.msra.mxu0 %v1774_v20  ;;  %1797 = vmatprep.subr.bf16.mxu1 %v1796_v41  ;;  %v489_v50 = vld [vmem:[#allocation11 + $0x58] sm:$0xff]  ;;  %v185_v52 = vld [vmem:[#allocation10 + $0xc0] sm:$0xff]  ;;  %v187_v53 = vld [vmem:[#allocation10 + $0xd0] sm:$0xff]  ;;  %v1802_v54 = vpack.c.bf16 %v484_v48, %v482_v47 }
  0x7b   :  { %1777 = vmatprep.subr.bf16.mxu0 %v1776_v21  ;;  %1799 = vmatpush1.bf16.msra.mxu1 %v1798_v45  ;;  %v190_v56 = vld [vmem:[#allocation10 + $0xe8] sm:$0xff]  ;;  %v1804_v57 = vpack.c.bf16 %v489_v50, %v487_v49  ;;  %v486_v58 = vld [vmem:[#allocation11 + $0x40] sm:$0xff]  ;;  %v488_v59 = vld [vmem:[#allocation11 + $0x50] sm:$0xff]  ;;  %v1790_v63 = vpack.c.bf16 %v187_v53, %v185_v52 }
  0x7c   :  { %1801 = vmatprep.subr.bf16.mxu1 %v1800_v46  ;;  %v192_v60 = vld [vmem:[#allocation10 + $0xf8] sm:$0xff]  ;;  %v491_v61 = vld [vmem:[#allocation11 + $0x68] sm:$0xff]  ;;  %v189_v1 = vld [vmem:[#allocation10 + $0xe0] sm:$0xff]  ;;  %v1806_v2 = vpack.c.bf16 %v488_v59, %v486_v58 }
  0x7d   :  { %v493_v62 = vld [vmem:[#allocation11 + $0x78] sm:$0xff]  ;;  %v1792_v3 = vpack.c.bf16 %v192_v60, %v190_v56  ;;  %v191_v4 = vld [vmem:[#allocation10 + $0xf0] sm:$0xff]  ;;  %v490_v6 = vld [vmem:[#allocation11 + $0x60] sm:$0xff] }
  0x7e   :  { %1779 = vmatpush1.bf16.msra.mxu0 %v1778_v26  ;;  %v1808_v5 = vpack.c.bf16 %v493_v62, %v491_v61  ;;  %v492_v7 = vld [vmem:[#allocation11 + $0x70] sm:$0xff]  ;;  %v495_v8 = vld [vmem:[#allocation11 + $0x88] sm:$0xff]  ;;  %v497_v9 = vld [vmem:[#allocation11 + $0x98] sm:$0xff]  ;;  %v1794_v10 = vpack.c.bf16 %v191_v4, %v189_v1 }
  0x7f   :  { %1781 = vmatprep.subr.bf16.mxu0 %v1780_v27  ;;  %1803 = vmatpush1.bf16.msra.mxu1 %v1802_v54  ;;  %v1810_v11 = vpack.c.bf16 %v492_v7, %v490_v6  ;;  %v1812_v12 = vpack.c.bf16 %v497_v9, %v495_v8  ;;  %v494_v13 = vld [vmem:[#allocation11 + $0x80] sm:$0xff]  ;;  %v496_v14 = vld [vmem:[#allocation11 + $0x90] sm:$0xff]  ;;  %v499_v16 = vld [vmem:[#allocation11 + $0xa8] sm:$0xff] }
  0x80   :  { %1805 = vmatprep.subr.bf16.mxu1 %v1804_v57  ;;  %v145_v15 = vld [vmem:[#allocation2] sm:$0xff]  ;;  %v501_v17 = vld [vmem:[#allocation11 + $0xb8] sm:$0xff]  ;;  %v500_v19 = vld [vmem:[#allocation11 + $0xb0] sm:$0xff]  ;;  %v1814_v20 = vpack.c.bf16 %v496_v14, %v494_v13 }
  0x81   :  { %v498_v18 = vld [vmem:[#allocation11 + $0xa0] sm:$0xff]  ;;  %v503_v21 = vld [vmem:[#allocation11 + $0xc8] sm:$0xff]  ;;  %v505_v22 = vld [vmem:[#allocation11 + $0xd8] sm:$0xff]  ;;  %v1816_v23 = vpack.c.bf16 %v501_v17, %v499_v16 }
  0x82   :  { %1783 = vmatpush1.bf16.msra.mxu0 %v1782_v34  ;;  %v146_v24 = vld [vmem:[#allocation2 + $0x8] sm:$0xff]  ;;  %v502_v25 = vld [vmem:[#allocation11 + $0xc0] sm:$0xff]  ;;  %v504_v26 = vld [vmem:[#allocation11 + $0xd0] sm:$0xff]  ;;  %v1818_v27 = vpack.c.bf16 %v500_v19, %v498_v18  ;;  %v1820_v30 = vpack.c.bf16 %v505_v22, %v503_v21 }
  0x83   :  { %1785 = vmatprep.subr.bf16.mxu0 %v1784_v40  ;;  %1807 = vmatpush1.bf16.msra.mxu1 %v1806_v2  ;;  %v507_v28 = vld [vmem:[#allocation11 + $0xe8] sm:$0xff]  ;;  %v509_v29 = vld [vmem:[#allocation11 + $0xf8] sm:$0xff]  ;;  %v147_v31 = vld [vmem:[#allocation2 + $0x10] sm:$0xff]  ;;  %v1822_v33 = vpack.c.bf16 %v504_v26, %v502_v25 }
  0x84   :  { %1809 = vmatprep.subr.bf16.mxu1 %v1808_v5  ;;  %v506_v32 = vld [vmem:[#allocation11 + $0xe0] sm:$0xff]  ;;  %v1824_v34 = vpack.c.bf16 %v509_v29, %v507_v28  ;;  %v508_v35 = vld [vmem:[#allocation11 + $0xf0] sm:$0xff]  ;;  %v511_v36 = vld [vmem:[#allocation11 + $0x108] sm:$0xff] }
  0x85   :  { %v513_v37 = vld [vmem:[#allocation11 + $0x118] sm:$0xff]  ;;  %v1826_v39 = vpack.c.bf16 %v508_v35, %v506_v32  ;;  %v510_v41 = vld [vmem:[#allocation11 + $0x100] sm:$0xff]  ;;  %v512_v42 = vld [vmem:[#allocation11 + $0x110] sm:$0xff] }
  0x86   :  { %1787 = vmatpush1.bf16.msra.mxu0 %v1786_v51  ;;  %v148_v38 = vld [vmem:[#allocation2 + $0x18] sm:$0xff]  ;;  %v1828_v40 = vpack.c.bf16 %v513_v37, %v511_v36  ;;  %v515_v43 = vld [vmem:[#allocation11 + $0x128] sm:$0xff]  ;;  %v149_v45 = vld [vmem:[#allocation2 + $0x20] sm:$0xff]  ;;  %v1830_v46 = vpack.c.bf16 %v512_v42, %v510_v41 }
  0x87   :  { %1789 = vmatprep.subr.bf16.mxu0 %v1788_v55  ;;  %1811 = vmatpush1.bf16.msra.mxu1 %v1810_v11  ;;  %v517_v44 = vld [vmem:[#allocation11 + $0x138] sm:$0xff]  ;;  %v514_v48 = vld [vmem:[#allocation11 + $0x120] sm:$0xff]  ;;  %v516_v49 = vld [vmem:[#allocation11 + $0x130] sm:$0xff] }
  0x88   :  { %1813 = vmatprep.subr.bf16.mxu1 %v1812_v12  ;;  %v1832_v47 = vpack.c.bf16 %v517_v44, %v515_v43  ;;  %v519_v50 = vld [vmem:[#allocation11 + $0x148] sm:$0xff]  ;;  %v521_v51 = vld [vmem:[#allocation11 + $0x158] sm:$0xff]  ;;  %v1834_v53 = vpack.c.bf16 %v516_v49, %v514_v48  ;;  %v518_v55 = vld [vmem:[#allocation11 + $0x140] sm:$0xff] }
  0x89   :  { %v150_v52 = vld [vmem:[#allocation2 + $0x28] sm:$0xff]  ;;  %v1836_v54 = vpack.c.bf16 %v521_v51, %v519_v50  ;;  %v520_v56 = vld [vmem:[#allocation11 + $0x150] sm:$0xff]  ;;  %v152_v59 = vld [vmem:[#allocation2 + $0x38] sm:$0xff] }
  0x8a   :  { %1791 = vmatpush1.bf16.msra.mxu0 %v1790_v63  ;;  %v151_v57 = vld [vmem:[#allocation2 + $0x30] sm:$0xff]  ;;  %v1838_v58 = vpack.c.bf16 %v520_v56, %v518_v55  ;;  %v153_v60 = vld [vmem:[#allocation2 + $0x40] sm:$0xff]  ;;  %v154_v61 = vld [vmem:[#allocation2 + $0x48] sm:$0xff] }
  0x8b   :  { %1793 = vmatprep.subr.bf16.mxu0 %v1792_v3  ;;  %1815 = vmatpush1.bf16.msra.mxu1 %v1814_v20  ;;  %v155_v62 = vld [vmem:[#allocation2 + $0x50] sm:$0xff]  ;;  %v156_v63 = vld [vmem:[#allocation2 + $0x58] sm:$0xff]  ;;  %v157_v1 = vld [vmem:[#allocation2 + $0x60] sm:$0xff] }
  0x8c   :  { %1817 = vmatprep.subr.bf16.mxu1 %v1816_v23  ;;  %v158_v2 = vld [vmem:[#allocation2 + $0x68] sm:$0xff]  ;;  %v159_v3 = vld [vmem:[#allocation2 + $0x70] sm:$0xff]  ;;  %v160_v4 = vld [vmem:[#allocation2 + $0x78] sm:$0xff] }
  0x8d   :  { %v523_v5 = vld [vmem:[#allocation11 + $0x168] sm:$0xff]  ;;  %v525_v6 = vld [vmem:[#allocation11 + $0x178] sm:$0xff]  ;;  %v522_v8 = vld [vmem:[#allocation11 + $0x160] sm:$0xff] }
  0x8e   :  { %1795 = vmatpush1.bf16.msra.mxu0 %v1794_v10  ;;  %v1840_v7 = vpack.c.bf16 %v525_v6, %v523_v5  ;;  %v524_v9 = vld [vmem:[#allocation11 + $0x170] sm:$0xff]  ;;  %v527_v11 = vld [vmem:[#allocation11 + $0x188] sm:$0xff]  ;;  %v529_v12 = vld [vmem:[#allocation11 + $0x198] sm:$0xff] }
  0x8f   :  { %1819 = vmatpush1.bf16.msra.mxu1 %v1818_v27  ;;  %v1842_v10 = vpack.c.bf16 %v524_v9, %v522_v8  ;;  %v1844_v13 = vpack.c.bf16 %v529_v12, %v527_v11  ;;  %v526_v14 = vld [vmem:[#allocation11 + $0x180] sm:$0xff]  ;;  %v531_v17 = vld [vmem:[#allocation11 + $0x1a8] sm:$0xff]  ;;  %v532_v20 = vld [vmem:[#allocation11 + $0x1b0] sm:$0xff] }
  0x90   :  { %1821 = vmatprep.subr.bf16.mxu1 %v1820_v30  ;;  %v530_v19 = vld [vmem:[#allocation11 + $0x1a0] sm:$0xff]  ;;  %v535_v22 = vld [vmem:[#allocation11 + $0x1c8] sm:$0xff]  ;;  %v537_v23 = vld [vmem:[#allocation11 + $0x1d8] sm:$0xff] }
  0x91   :  { %270 = vmatmul.mubr.f32.vlgmr.msra.gmra.mrb[0].mxu0 %v145_v15  ;;  %v528_v15 = vld [vmem:[#allocation11 + $0x190] sm:$0xff]  ;;  %v1850_v21 = vpack.c.bf16 %v532_v20, %v530_v19  ;;  %v534_v25 = vld [vmem:[#allocation11 + $0x1c0] sm:$0xff]  ;;  %v539_v28 = vld [vmem:[#allocation11 + $0x1e8] sm:$0xff] }
  0x92   :  { %275 = vmatprep.mubr.f32.mxu0 %v2274_v0  ;;  %v1846_v16 = vpack.c.bf16 %v528_v15, %v526_v14  ;;  %v536_v26 = vld [vmem:[#allocation11 + $0x1d0] sm:$0xff]  ;;  %v541_v29 = vld [vmem:[#allocation11 + $0x1f8] sm:$0xff]  ;;  %v193_v37 = vld [vmem:[%s3144_s5] sm:$0x3] }
  0x93   :  { %1823 = vmatpush1.bf16.msra.mxu1 %v1822_v33  ;;  %v1854_v27 = vpack.c.bf16 %v536_v26, %v534_v25  ;;  %v1856_v30 = vpack.c.bf16 %v541_v29, %v539_v28  ;;  %v540_v32 = vld [vmem:[#allocation11 + $0x1f0] sm:$0xff] }
  0x94   :  { %1825 = vmatprep.subr.bf16.mxu1 %v1824_v34  ;;  %v195_v34 = vlaneseq }
  0x95   :  { %276 = vmatmul.mubr.f32.gmra.mrb[2].mxu0 %v146_v24  ;;  %v1852_v24 = vpack.c.bf16 %v537_v23, %v535_v22 }
  0x96   :  { %281 = vmatprep.mubr.f32.mxu0 %v2274_v0  ;;  %v2422_v35 = vshrl.u32 %v195_v34, 7 }
  0x97   :  { %1827 = vmatpush1.bf16.msra.mxu1 %v1826_v39 }
  0x98   :  { %1829 = vmatprep.subr.bf16.mxu1 %v1828_v40  ;;  %v197_v36 = vsub.s32 0, %v2422_v35 }
  0x99   :  { %282 = vmatmul.mubr.f32.gmra.mrb[4].mxu0 %v147_v31  ;;  %v538_v31 = vld [vmem:[#allocation11 + $0x1e0] sm:$0xff] }
  0x9a   :  { %287 = vmatprep.mubr.f32.mxu0 %v2274_v0  ;;  %v1858_v33 = vpack.c.bf16 %v540_v32, %v538_v31  ;;  %v2431_v39 = vrot.slane %v193_v37, %v197_v36 }
  0x9b   :  { %1831 = vmatpush1.bf16.msra.mxu1 %v1830_v46 }
  0x9c   :  { %1833 = vmatprep.subr.bf16.mxu1 %v1832_v47 }
  0x9d   :  { %288 = vmatmul.mubr.f32.gmra.mrb[6].mxu0 %v148_v38  ;;  %v201_v38 = vsub.s32 1, %v2422_v35 }
  0x9e   :  { %293 = vmatprep.mubr.f32.mxu0 %v2274_v0 }
  0x9f   :  { %1835 = vmatpush1.bf16.msra.mxu1 %v1834_v53  ;;  %v2435_v40 = vrot.slane %v193_v37, %v201_v38 }
  0xa0   :  { %1837 = vmatprep.subr.bf16.mxu1 %v1836_v54 }
  0xa1   :  { %294 = vmatmul.mubr.f32.gmra.mrb[8].mxu0 %v149_v45 }
  0xa2   :  { %299 = vmatprep.mubr.f32.mxu0 %v2274_v0 }
  0xa3   :  { %1839 = vmatpush1.bf16.msra.mxu1 %v1838_v58 }
  0xa4   :  { %1841 = vmatprep.subr.bf16.mxu1 %v1840_v7 }
  0xa5   :  { %300 = vmatmul.mubr.f32.gmra.mrb[10].mxu0 %v150_v52 }
  0xa6   :  { %305 = vmatprep.mubr.f32.mxu0 %v2274_v0 }
  0xa7   :  { %1843 = vmatpush1.bf16.msra.mxu1 %v1842_v10 }
  0xa8   :  { %1845 = vmatprep.subr.bf16.mxu1 %v1844_v13 }
  0xa9   :  { %306 = vmatmul.mubr.f32.gmra.mrb[12].mxu0 %v151_v57 }
  0xaa   :  { %311 = vmatprep.mubr.f32.mxu0 %v2274_v0 }
  0xab   :  { %1847 = vmatpush1.bf16.msra.mxu1 %v1846_v16 }
  0xad   :  { %312 = vmatmul.mubr.f32.gmra.mrb[14].mxu0 %v152_v59 }
  0xae   :  { %317 = vmatprep.mubr.f32.mxu0 %v2274_v0 }
  0xb1   :  { %318 = vmatmul.mubr.f32.gmra.mrb[16].mxu0 %v153_v60 }
  0xb2   :  { %323 = vmatprep.mubr.f32.mxu0 %v2274_v0 }
  0xb5   :  { %324 = vmatmul.mubr.f32.gmra.mrb[18].mxu0 %v154_v61 }
  0xb6   :  { %329 = vmatprep.mubr.f32.mxu0 %v2274_v0 }
  0xb9   :  { %330 = vmatmul.mubr.f32.gmra.mrb[20].mxu0 %v155_v62 }
  0xba   :  { %335 = vmatprep.mubr.f32.mxu0 %v2274_v0 }
  0xbd   :  { %336 = vmatmul.mubr.f32.gmra.mrb[22].mxu0 %v156_v63 }
  0xbe   :  { %341 = vmatprep.mubr.f32.mxu0 %v2274_v0 }
  0xc1   :  { %342 = vmatmul.mubr.f32.gmra.mrb[24].mxu0 %v157_v1 }
  0xc2   :  { %347 = vmatprep.mubr.f32.mxu0 %v2274_v0 }
  0xc5   :  { %348 = vmatmul.mubr.f32.gmra.mrb[26].mxu0 %v158_v2 }
  0xc6   :  { %353 = vmatprep.mubr.f32.mxu0 %v2274_v0 }
  0xc9   :  { %354 = vmatmul.mubr.f32.gmra.mrb[28].mxu0 %v159_v3 }
  0xca   :  { %359 = vmatprep.mubr.f32.mxu0 %v2274_v0  ;;  %v533_v0 = vld [vmem:[#allocation11 + $0x1b8] sm:$0xff] }
  0xcb   :  { %v1848_v18 = vpack.c.bf16 %v533_v0, %v531_v17 }
  0xcd   :  { %360 = vmatmul.mubr.f32.gmra.mrb[30].mxu0 %v160_v4  ;;  %1849 = vmatprep.subr.bf16.mxu1 %v1848_v18 }
  0xce   :  { %1851 = vmatpush1.bf16.msra.mxu1 %v1850_v21 }
  0xcf   :  { %1853 = vmatprep.subr.bf16.mxu1 %v1852_v24 }
  0xd2   :  { %1855 = vmatpush1.bf16.msra.mxu1 %v1854_v27 }
  0xd3   :  { %1857 = vmatprep.subr.bf16.mxu1 %v1856_v30 }
  0xd6   :  { %1859 = vmatpush1.bf16.msra.mxu1 %v1858_v33 }
 0x164   :  { %v271_v41 = vpop.f32.mrb[0].mxu0 }
 0x165   :  { %v272_v42 = vadd.f32 %v271_v41, %v2431_v39  ;;  %v273_v43 = vpop.f32.mrb[1].mxu0 }
 0x166   :  { %v274_v44 = vadd.f32 %v273_v43, %v2435_v40 }
 0x167   :  { %v382_v45 = vmin.f32 %v272_v42, 0.0  ;;  %vm366_vm0 = vcmp.gt.f32.partialorder %v272_v42, 0.0 }
 0x168   :  { %v277_v46 = vpop.f32.mrb[2].mxu0  ;;  %v462_v47 = vmax.f32 %v274_v44, 0.0 }
 0x169   :  { %v398_v48 = vmul.f32 1.442695, %v382_v45  ;;  %v278_v49 = vadd.f32 %v277_v46, %v2431_v39  ;;  %v279_v50 = vpop.f32.mrb[3].mxu0 }
 0x16a   :  { %618 = vmatprep.mubr.f32.mxu1 %v462_v47  ;;  %v280_v62 = vadd.f32 %v279_v50, %v2435_v40 }
 0x16b   :  { %1906 = vpow2.f32 %v398_v48  ;;  %v383_v51 = vmin.f32 %v278_v49, 0.0  ;;  %vm367_vm1 = vcmp.gt.f32.partialorder %v278_v49, 0.0 }
 0x16c   :  { %v283_v52 = vpop.f32.mrb[4].mxu0  ;;  %v463_v7 = vmax.f32 %v280_v62, 0.0 }
 0x16d   :  { %v400_v53 = vmul.f32 1.442695, %v383_v51  ;;  %v284_v54 = vadd.f32 %v283_v52, %v2431_v39  ;;  %v285_v55 = vpop.f32.mrb[5].mxu0 }
 0x16e   :  { %v286_v8 = vadd.f32 %v285_v55, %v2435_v40 }
 0x16f   :  { %1908 = vpow2.f32 %v400_v53  ;;  %v384_v56 = vmin.f32 %v284_v54, 0.0  ;;  %vm368_vm2 = vcmp.gt.f32.partialorder %v284_v54, 0.0 }
 0x170   :  { %v289_v57 = vpop.f32.mrb[6].mxu0  ;;  %v464_v17 = vmax.f32 %v286_v8, 0.0 }
 0x171   :  { %v402_v58 = vmul.f32 1.442695, %v384_v56  ;;  %v290_v59 = vadd.f32 %v289_v57, %v2431_v39  ;;  %v291_v60 = vpop.f32.mrb[7].mxu0 }
 0x172   :  { %v292_v0 = vadd.f32 %v291_v60, %v2435_v40 }
 0x173   :  { %1910 = vpow2.f32 %v402_v58  ;;  %v385_v61 = vmin.f32 %v290_v59, 0.0  ;;  %vm369_vm3 = vcmp.gt.f32.partialorder %v290_v59, 0.0 }
 0x174   :  { %v295_v63 = vpop.f32.mrb[8].mxu0  ;;  %v465_v26 = vmax.f32 %v292_v0, 0.0 }
 0x175   :  { %v1907_v1 = vpop.eup %1906  ;;  %v404_v2 = vmul.f32 1.442695, %v385_v61  ;;  %v2444_v3 = vadd.f32 %v295_v63, %v2431_v39  ;;  %v297_v4 = vpop.f32.mrb[9].mxu0 }
 0x176   :  { %v1620_v5 = vadd.f32 -1.0, %v1907_v1  ;;  %v298_v27 = vadd.f32 %v297_v4, %v2435_v40 }
 0x177   :  { %1912 = vpow2.f32 %v404_v2  ;;  %v386_v6 = vmin.f32 %v2444_v3, 0.0  ;;  %vm370_vm4 = vcmp.gt.f32.partialorder %v2444_v3, 0.0 }
 0x178   :  { %v301_v9 = vpop.f32.mrb[10].mxu0  ;;  %v446_v10 = vsel %vm366_vm0, %v272_v42, %v1620_v5  ;;  %v466_v42 = vmax.f32 %v298_v27, 0.0 }
 0x179   :  { %v1909_v11 = vpop.eup %1908  ;;  %v406_v12 = vmul.f32 1.442695, %v386_v6  ;;  %v2449_v13 = vadd.f32 %v301_v9, %v2431_v39  ;;  %v303_v14 = vpop.f32.mrb[11].mxu0  ;;  %619 = vmatmul.mubr.f32.vlgmr.msra.gmra.mrb[0].mxu1 %v446_v10 }
 0x17a   :  { %624 = vmatprep.mubr.f32.mxu1 %v463_v7  ;;  %v1621_v15 = vadd.f32 -1.0, %v1909_v11  ;;  %v304_v43 = vadd.f32 %v303_v14, %v2435_v40 }
 0x17b   :  { %1914 = vpow2.f32 %v406_v12  ;;  %v387_v16 = vmin.f32 %v2449_v13, 0.0  ;;  %vm371_vm5 = vcmp.gt.f32.partialorder %v2449_v13, 0.0 }
 0x17c   :  { %v307_v18 = vpop.f32.mrb[12].mxu0  ;;  %v447_v19 = vsel %vm367_vm1, %v278_v49, %v1621_v15  ;;  %v467_v52 = vmax.f32 %v304_v43, 0.0 }
 0x17d   :  { %v1911_v20 = vpop.eup %1910  ;;  %v408_v21 = vmul.f32 1.442695, %v387_v16  ;;  %v2454_v22 = vadd.f32 %v307_v18, %v2431_v39  ;;  %v309_v23 = vpop.f32.mrb[13].mxu0  ;;  %625 = vmatmul.mubr.f32.gmra.mrb[2].mxu1 %v447_v19 }
 0x17e   :  { %630 = vmatprep.mubr.f32.mxu1 %v464_v17  ;;  %v1622_v24 = vadd.f32 -1.0, %v1911_v20  ;;  %v310_v53 = vadd.f32 %v309_v23, %v2435_v40 }
 0x17f   :  { %1916 = vpow2.f32 %v408_v21  ;;  %v388_v25 = vmin.f32 %v2454_v22, 0.0  ;;  %vm372_vm6 = vcmp.gt.f32.partialorder %v2454_v22, 0.0 }
 0x180   :  { %v313_v28 = vpop.f32.mrb[14].mxu0  ;;  %v448_v29 = vsel %vm368_vm2, %v284_v54, %v1622_v24  ;;  %v468_v62 = vmax.f32 %v310_v53, 0.0 }
 0x181   :  { %v1913_v30 = vpop.eup %1912  ;;  %v410_v31 = vmul.f32 1.442695, %v388_v25  ;;  %v2459_v32 = vadd.f32 %v313_v28, %v2431_v39  ;;  %v315_v33 = vpop.f32.mrb[15].mxu0  ;;  %631 = vmatmul.mubr.f32.gmra.mrb[4].mxu1 %v448_v29 }
 0x182   :  { %636 = vmatprep.mubr.f32.mxu1 %v465_v26  ;;  %v1623_v37 = vadd.f32 -1.0, %v1913_v30  ;;  %v316_v63 = vadd.f32 %v315_v33, %v2435_v40 }
 0x183   :  { %1918 = vpow2.f32 %v410_v31  ;;  %v389_v41 = vmin.f32 %v2459_v32, 0.0  ;;  %vm373_vm7 = vcmp.gt.f32.partialorder %v2459_v32, 0.0 }
 0x184   :  { %v319_v44 = vpop.f32.mrb[16].mxu0  ;;  %v449_v45 = vsel %vm369_vm3, %v290_v59, %v1623_v37  ;;  %v469_v9 = vmax.f32 %v316_v63, 0.0 }
 0x185   :  { %v1915_v46 = vpop.eup %1914  ;;  %v412_v47 = vmul.f32 1.442695, %v389_v41  ;;  %v2464_v48 = vadd.f32 %v319_v44, %v2431_v39  ;;  %v321_v49 = vpop.f32.mrb[17].mxu0  ;;  %637 = vmatmul.mubr.f32.gmra.mrb[6].mxu1 %v449_v45 }
 0x186   :  { %642 = vmatprep.mubr.f32.mxu1 %v466_v42  ;;  %v1624_v50 = vadd.f32 -1.0, %v1915_v46  ;;  %v322_v10 = vadd.f32 %v321_v49, %v2435_v40 }
 0x187   :  { %1920 = vpow2.f32 %v412_v47  ;;  %v390_v51 = vmin.f32 %v2464_v48, 0.0  ;;  %vm374_vm8 = vcmp.gt.f32.partialorder %v2464_v48, 0.0 }
 0x188   :  { %v325_v54 = vpop.f32.mrb[18].mxu0  ;;  %v450_v55 = vsel %vm370_vm4, %v2444_v3, %v1624_v50  ;;  %v470_v18 = vmax.f32 %v322_v10, 0.0 }
 0x189   :  { %v1917_v56 = vpop.eup %1916  ;;  %v414_v57 = vmul.f32 1.442695, %v390_v51  ;;  %v2471_v58 = vadd.f32 %v325_v54, %v2431_v39  ;;  %v327_v59 = vpop.f32.mrb[19].mxu0  ;;  %643 = vmatmul.mubr.f32.gmra.mrb[8].mxu1 %v450_v55 }
 0x18a   :  { %648 = vmatprep.mubr.f32.mxu1 %v467_v52  ;;  %v1625_v60 = vadd.f32 -1.0, %v1917_v56  ;;  %v328_v19 = vadd.f32 %v327_v59, %v2435_v40 }
 0x18b   :  { %1922 = vpow2.f32 %v414_v57  ;;  %v391_v61 = vmin.f32 %v2471_v58, 0.0  ;;  %vm375_vm9 = vcmp.gt.f32.partialorder %v2471_v58, 0.0 }
 0x18c   :  { %v331_v1 = vpop.f32.mrb[20].mxu0  ;;  %v451_v2 = vsel %vm371_vm5, %v2449_v13, %v1625_v60  ;;  %v471_v28 = vmax.f32 %v328_v19, 0.0  ;;  %v1890_v19 = vld [vmem:[#allocation7] sm:$0xff]  }
 0x18d   :  { %v1919_v3 = vpop.eup %1918  ;;  %v416_v4 = vmul.f32 1.442695, %v391_v61  ;;  %v2478_v5 = vadd.f32 %v331_v1, %v2431_v39  ;;  %v333_v6 = vpop.f32.mrb[21].mxu0  ;;  %649 = vmatmul.mubr.f32.gmra.mrb[10].mxu1 %v451_v2  ;;  %1716 = vmatprep.mubr.bf16.mxu0 %v1890_v19 }
 0x18e   :  { %654 = vmatprep.mubr.f32.mxu1 %v468_v62  ;;  %v1626_v7 = vadd.f32 -1.0, %v1919_v3  ;;  %v334_v29 = vadd.f32 %v333_v6, %v2435_v40 }
 0x18f   :  { %1924 = vpow2.f32 %v416_v4  ;;  %v392_v8 = vmin.f32 %v2478_v5, 0.0  ;;  %vm376_vm10 = vcmp.gt.f32.partialorder %v2478_v5, 0.0 }
 0x190   :  { %v337_v11 = vpop.f32.mrb[22].mxu0  ;;  %v452_v12 = vsel %vm372_vm6, %v2454_v22, %v1626_v7  ;;  %v472_v45 = vmax.f32 %v334_v29, 0.0 }
 0x191   :  { %v1921_v13 = vpop.eup %1920  ;;  %v418_v14 = vmul.f32 1.442695, %v392_v8  ;;  %v2485_v15 = vadd.f32 %v337_v11, %v2431_v39  ;;  %v339_v16 = vpop.f32.mrb[23].mxu0  ;;  %655 = vmatmul.mubr.f32.gmra.mrb[12].mxu1 %v452_v12 }
 0x192   :  { %660 = vmatprep.mubr.f32.mxu1 %v469_v9  ;;  %v1627_v17 = vadd.f32 -1.0, %v1921_v13  ;;  %v340_v46 = vadd.f32 %v339_v16, %v2435_v40 }
 0x193   :  { %1926 = vpow2.f32 %v418_v14  ;;  %v393_v0 = vmin.f32 %v2485_v15, 0.0  ;;  %vm377_vm11 = vcmp.gt.f32.partialorder %v2485_v15, 0.0 }
 0x194   :  { %v343_v20 = vpop.f32.mrb[24].mxu0  ;;  %v453_v21 = vsel %vm373_vm7, %v2459_v32, %v1627_v17  ;;  %v473_v56 = vmax.f32 %v340_v46, 0.0 }
 0x195   :  { %v1923_v22 = vpop.eup %1922  ;;  %v420_v23 = vmul.f32 1.442695, %v393_v0  ;;  %v2492_v24 = vadd.f32 %v343_v20, %v2431_v39  ;;  %v345_v25 = vpop.f32.mrb[25].mxu0  ;;  %661 = vmatmul.mubr.f32.gmra.mrb[14].mxu1 %v453_v21  ;;  %v542_v20 = vld [vmem:[%s3146_s7] sm:$0x3]  ;;  %s2275_s7 = smov [#allocation13]  }
 0x196   :  { %666 = vmatprep.mubr.f32.mxu1 %v470_v18  ;;  %v1628_v26 = vadd.f32 -1.0, %v1923_v22  ;;  %v346_v57 = vadd.f32 %v345_v25, %v2435_v40  ;;  %v2519_v21 = vrot.slane %v542_v20, %v197_v36  ;;  %v2523_v22 = vrot.slane %v542_v20, %v201_v38  ;;  %s1605_s18 = sshll.u32 %s2275_s7, 4  ;;  %s1606_s18 = int_to_ptr.vmem [resolvable:$true] %s1605_s18 }
 0x197   :  { %1928 = vpow2.f32 %v420_v23  ;;  %v394_v27 = vmin.f32 %v2492_v24, 0.0  ;;  %vm378_vm12 = vcmp.gt.f32.partialorder %v2492_v24, 0.0  ;;  %v1900_v23 = vld [vmem:[#allocation5 + $0x20] sm:$0xff]   ;;  %s2230_s19 = scalar_lea.vmem %s1606_s18, 2048  ;;  %p2235_p7 = scmp.lt.s32.totalorder %s1606_s18, %s1606_s18 }
 0x198   :  { %v349_v30 = vpop.f32.mrb[26].mxu0  ;;  %v454_v31 = vsel %vm374_vm8, %v2464_v48, %v1628_v26  ;;  %v474_v4 = vmax.f32 %v346_v57, 0.0  ;;  %p2231_p6 = scmp.ne.s32.totalorder %s1606_s18, %s2230_s19  ;;  %p2236_p8 = scmp.lt.s32.totalorder %s2230_s19, %s2230_s19 }
 0x199   :  { %v1925_v32 = vpop.eup %1924  ;;  %v422_v33 = vmul.f32 1.442695, %v394_v27  ;;  %v350_v37 = vadd.f32 %v349_v30, %v2431_v39  ;;  %v351_v41 = vpop.f32.mrb[27].mxu0  ;;  %667 = vmatmul.mubr.f32.gmra.mrb[16].mxu1 %v454_v31 }
 0x19a   :  { %v352_v42 = vadd.f32 %v351_v41, %v2435_v40  ;;  %672 = vmatprep.mubr.f32.mxu1 %v471_v28  ;;  %v1629_v43 = vadd.f32 -1.0, %v1925_v32  ;;  %p2237_p9 = por %p2236_p8, %p2235_p7 }
 0x19b   :  { %1930 = vpow2.f32 %v422_v33  ;;  %v395_v44 = vmin.f32 %v350_v37, 0.0  ;;  %vm379_vm13 = vcmp.gt.f32.partialorder %v350_v37, 0.0 }
 0x19c   :  { %v355_v47 = vpop.f32.mrb[28].mxu0  ;;  %v455_v48 = vsel %vm375_vm9, %v2471_v58, %v1629_v43  ;;  %p2238_p10 = pnand %p2237_p9, %p2231_p6 }
 0x19d   :  { %v1927_v49 = vpop.eup %1926  ;;  %v424_v50 = vmul.f32 1.442695, %v395_v44  ;;  %v356_v51 = vadd.f32 %v355_v47, %v2431_v39  ;;  %v357_v52 = vpop.f32.mrb[29].mxu0  ;;  %673 = vmatmul.mubr.f32.gmra.mrb[18].mxu1 %v455_v48 }
 0x19e   :  { %v358_v53 = vadd.f32 %v357_v52, %v2435_v40  ;;  %678 = vmatprep.mubr.f32.mxu1 %v472_v45  ;;  %v1630_v54 = vadd.f32 -1.0, %v1927_v49 }
 0x19f   :  { %1932 = vpow2.f32 %v424_v50  ;;  %v396_v55 = vmin.f32 %v356_v51, 0.0  ;;  %vm380_vm14 = vcmp.gt.f32.partialorder %v356_v51, 0.0 }
 0x1a0   :  { %v361_v59 = vpop.f32.mrb[30].mxu0  ;;  %v456_v58 = vsel %vm376_vm10, %v2478_v5, %v1630_v54  ;;  %v476_v11 = vmax.f32 %v358_v53, 0.0 }
 0x1a1   :  { %v1929_v60 = vpop.eup %1928  ;;  %v426_v61 = vmul.f32 1.442695, %v396_v55  ;;  %v362_v62 = vadd.f32 %v361_v59, %v2431_v39  ;;  %v363_v63 = vpop.f32.mrb[31].mxu0  ;;  %679 = vmatmul.mubr.f32.gmra.mrb[20].mxu1 %v456_v58  ;;  %v475_v39 = vmax.f32 %v352_v42, 0.0 }
 0x1a2   :  { %v364_v1 = vadd.f32 %v363_v63, %v2435_v40  ;;  %684 = vmatprep.mubr.f32.mxu1 %v473_v56  ;;  %v1631_v2 = vadd.f32 -1.0, %v1929_v60 }
 0x1a3   :  { %1934 = vpow2.f32 %v426_v61  ;;  %v397_v3 = vmin.f32 %v362_v62, 0.0  ;;  %vm381_vm15 = vcmp.gt.f32.partialorder %v362_v62, 0.0 }
 0x1a4   :  { %v457_v6 = vsel %vm377_vm11, %v2485_v15, %v1631_v2  ;;  %v477_v15 = vmax.f32 %v364_v1, 0.0 }
 0x1a5   :  { %v1931_v7 = vpop.eup %1930  ;;  %v428_v8 = vmul.f32 1.442695, %v397_v3  ;;  %685 = vmatmul.mubr.f32.gmra.mrb[22].mxu1 %v457_v6 }
 0x1a6   :  { %690 = vmatprep.mubr.f32.mxu1 %v474_v4  ;;  %v1632_v5 = vadd.f32 -1.0, %v1931_v7 }
 0x1a7   :  { %1936 = vpow2.f32 %v428_v8 }
 0x1a8   :  { %v458_v40 = vsel %vm378_vm12, %v2492_v24, %v1632_v5 }
 0x1a9   :  { %v1933_v9 = vpop.eup %1932  ;;  %691 = vmatmul.mubr.f32.gmra.mrb[24].mxu1 %v458_v40 }
 0x1aa   :  { %696 = vmatprep.mubr.f32.mxu1 %v475_v39  ;;  %v1633_v10 = vadd.f32 -1.0, %v1933_v9 }
 0x1ac   :  { %v459_v12 = vsel %vm379_vm13, %v350_v37, %v1633_v10 }
 0x1ad   :  { %v1935_v13 = vpop.eup %1934  ;;  %697 = vmatmul.mubr.f32.gmra.mrb[26].mxu1 %v459_v12 }
 0x1ae   :  { %702 = vmatprep.mubr.f32.mxu1 %v476_v11  ;;  %v1634_v14 = vadd.f32 -1.0, %v1935_v13 }
 0x1b0   :  { %v460_v16 = vsel %vm380_vm14, %v356_v51, %v1634_v14 }
 0x1b1   :  { %v1937_v17 = vpop.eup %1936  ;;  %703 = vmatmul.mubr.f32.gmra.mrb[28].mxu1 %v460_v16 }
 0x1b2   :  { %708 = vmatprep.mubr.f32.mxu1 %v477_v15  ;;  %v1635_v0 = vadd.f32 -1.0, %v1937_v17 }
 0x1b4   :  { %v461_v18 = vsel %vm381_vm15, %v362_v62, %v1635_v0 }
 0x1b5   :  { %709 = vmatmul.mubr.f32.gmra.mrb[30].mxu1 %v461_v18 }
 0x1b6   :  { %1756 = vmatprep.mubr.bf16.mxu1 %v1900_v23 }
 0x24c   :  { %v620_v24 = vpop.f32.mrb[0].mxu1 }
 0x24d   :  { %v2526_v25 = vadd.f32 %v620_v24, %v2519_v21  ;;  %v622_v26 = vpop.f32.mrb[1].mxu1 }
 0x24e   :  { %v623_v27 = vadd.f32 %v622_v26, %v2523_v22 }
 0x24f   :  { %v731_v28 = vmin.f32 %v2526_v25, 0.0  ;;  %vm715_vm0 = vcmp.gt.f32.partialorder %v2526_v25, 0.0 }
 0x250   :  { %v811_v29 = vmax.f32 %v623_v27, 0.0  ;;  %v626_v30 = vpop.f32.mrb[2].mxu1 }
 0x251   :  { %v747_v31 = vmul.f32 1.442695, %v731_v28  ;;  %v2531_v36 = vadd.f32 %v626_v30, %v2519_v21  ;;  %v628_v35 = vpop.f32.mrb[3].mxu1 }
 0x252   :  { %v2533_v38 = vadd.f32 1e-06, %v811_v29  ;;  %v629_v32 = vadd.f32 %v628_v35, %v2523_v22 }
 0x253   :  { %1938 = vpow2.f32 %v747_v31  ;;  %v732_v33 = vmin.f32 %v2531_v36, 0.0  ;;  %vm716_vm1 = vcmp.gt.f32.partialorder %v2531_v36, 0.0 }
 0x254   :  { %v843_v37 = vsub.f32 0.0, %v2533_v38  ;;  %v812_v41 = vmax.f32 %v629_v32, 0.0  ;;  %v632_v42 = vpop.f32.mrb[4].mxu1 }
 0x255   :  { %v749_v43 = vmul.f32 1.442695, %v732_v33  ;;  %v2539_v44 = vadd.f32 %v632_v42, %v2519_v21  ;;  %v634_v45 = vpop.f32.mrb[5].mxu1 }
 0x256   :  { %v859_v46 = vmul.f32 1.442695, %v843_v37  ;;  %v2541_v47 = vadd.f32 1e-06, %v812_v41  ;;  %v635_v48 = vadd.f32 %v634_v45, %v2523_v22 }
 0x257   :  { %1940 = vpow2.f32 %v749_v43  ;;  %v733_v49 = vmin.f32 %v2539_v44, 0.0  ;;  %vm717_vm2 = vcmp.gt.f32.partialorder %v2539_v44, 0.0 }
 0x258   :  { %1942 = vpow2.f32 %v859_v46  ;;  %v844_v50 = vsub.f32 0.0, %v2541_v47  ;;  %v813_v51 = vmax.f32 %v635_v48, 0.0  ;;  %v638_v52 = vpop.f32.mrb[6].mxu1 }
 0x259   :  { %v2547_v53 = vadd.f32 %v638_v52, %v2519_v21  ;;  %v640_v54 = vpop.f32.mrb[7].mxu1  ;;  %v751_v59 = vmul.f32 1.442695, %v733_v49 }
 0x25a   :  { %v861_v55 = vmul.f32 1.442695, %v844_v50  ;;  %v2549_v56 = vadd.f32 1e-06, %v813_v51  ;;  %v641_v57 = vadd.f32 %v640_v54, %v2523_v22 }
 0x25b   :  { %v734_v58 = vmin.f32 %v2547_v53, 0.0  ;;  %vm718_vm3 = vcmp.gt.f32.partialorder %v2547_v53, 0.0 }
 0x25c   :  { %1944 = vpow2.f32 %v861_v55  ;;  %v814_v60 = vmax.f32 %v641_v57, 0.0  ;;  %v644_v61 = vpop.f32.mrb[8].mxu1  ;;  %v845_v63 = vsub.f32 0.0, %v2549_v56 }
 0x25d   :  { %v1939_v62 = vpop.eup %1938  ;;  %v2555_v1 = vadd.f32 %v644_v61, %v2519_v21  ;;  %v646_v2 = vpop.f32.mrb[9].mxu1  ;;  %v753_v3 = vmul.f32 1.442695, %v734_v58  ;;  %1946 = vpow2.f32 %v751_v59 }
 0x25e   :  { %v2557_v4 = vadd.f32 1e-06, %v814_v60  ;;  %v647_v6 = vadd.f32 %v646_v2, %v2523_v22  ;;  %v1636_v7 = vadd.f32 -1.0, %v1939_v62  ;;  %v863_v10 = vmul.f32 1.442695, %v845_v63 }
 0x25f   :  { %v735_v8 = vmin.f32 %v2555_v1, 0.0  ;;  %1948 = vpow2.f32 %v753_v3  ;;  %vm719_vm4 = vcmp.gt.f32.partialorder %v2555_v1, 0.0 }
 0x260   :  { %v846_v5 = vsub.f32 0.0, %v2557_v4  ;;  %v815_v39 = vmax.f32 %v647_v6, 0.0  ;;  %v650_v40 = vpop.f32.mrb[10].mxu1  ;;  %v795_v17 = vsel %vm715_vm0, %v2526_v25, %v1636_v7 }
 0x261   :  { %v1941_v9 = vpop.eup %1940  ;;  %v2564_v11 = vadd.f32 %v650_v40, %v2519_v21  ;;  %v652_v12 = vpop.f32.mrb[11].mxu1  ;;  %v755_v0 = vmul.f32 1.442695, %v735_v8 }
 0x262   :  { %v1943_v13 = vpop.eup %1942  ;;  %v865_v14 = vmul.f32 1.442695, %v846_v5  ;;  %v2566_v15 = vadd.f32 1e-06, %v815_v39  ;;  %v653_v16 = vadd.f32 %v652_v12, %v2523_v22  ;;  %v1637_v19 = vadd.f32 -1.0, %v1941_v9 }
 0x263   :  { %v736_v18 = vmin.f32 %v2564_v11, 0.0  ;;  %v891_v29 = vmul.f32 %v1943_v13, %v795_v17  ;;  %v907_v52 = vmul.f32 %v1943_v13, %v2533_v38  ;;  %vm720_vm5 = vcmp.gt.f32.partialorder %v2564_v11, 0.0 }
 0x264   :  { %1950 = vpow2.f32 %v865_v14  ;;  %v847_v20 = vsub.f32 0.0, %v2566_v15  ;;  %v816_v23 = vmax.f32 %v653_v16, 0.0  ;;  %v656_v24 = vpop.f32.mrb[12].mxu1  ;;  %v796_v33 = vsel %vm716_vm1, %v2531_v36, %v1637_v19 }
 0x265   :  { %v757_v26 = vmul.f32 1.442695, %v736_v18  ;;  %v2573_v27 = vadd.f32 %v656_v24, %v2519_v21  ;;  %v658_v28 = vpop.f32.mrb[13].mxu1  ;;  %1952 = vpow2.f32 %v863_v10  ;;  %v923_v5 = vmul.f32 %v1943_v13, %v907_v52 }
 0x266   :  { %v1945_v30 = vpop.eup %1944  ;;  %v2575_v31 = vadd.f32 1e-06, %v816_v23  ;;  %v659_v25 = vadd.f32 %v658_v28, %v2523_v22  ;;  %1954 = vpow2.f32 %v755_v0  ;;  %v867_v35 = vmul.f32 1.442695, %v847_v20 }
 0x267   :  { %v737_v32 = vmin.f32 %v2573_v27, 0.0  ;;  %v1947_v43 = vpop.eup %1946  ;;  %v908_v45 = vmul.f32 %v1945_v30, %v2541_v47  ;;  %1956 = vpow2.f32 %v757_v26  ;;  %v892_v49 = vmul.f32 %v1945_v30, %v796_v33 }
 0x268   :  { %v848_v37 = vsub.f32 0.0, %v2575_v31  ;;  %v817_v41 = vmax.f32 %v659_v25, 0.0  ;;  %v662_v42 = vpop.f32.mrb[14].mxu1  ;;  %1958 = vpow2.f32 %v867_v35  ;;  %v1638_v57 = vadd.f32 -1.0, %v1947_v43 }
 0x269   :  { %v2584_v46 = vadd.f32 %v662_v42, %v2519_v21  ;;  %v664_v48 = vpop.f32.mrb[15].mxu1  ;;  %v759_v54 = vmul.f32 1.442695, %v737_v32  ;;  %v1949_v47 = vpop.eup %1948  ;;  %v924_v61 = vmul.f32 %v1945_v30, %v908_v45  ;;  %v2593_v63 = vpack.c.bf16 %v892_v49, %v891_v29 }
 0x26a   :  { %v869_v50 = vmul.f32 1.442695, %v848_v37  ;;  %v2587_v51 = vadd.f32 1e-06, %v817_v41  ;;  %v665_v36 = vadd.f32 %v664_v48, %v2523_v22  ;;  %v1639_v39 = vadd.f32 -1.0, %v1949_v47 }
 0x26b   :  { %v738_v55 = vmin.f32 %v2584_v46, 0.0  ;;  %1860 = vmatprep.subr.bf16.mxu1 %v2593_v63  ;;  %v797_v10 = vsel %vm717_vm2, %v2539_v44, %v1638_v57  ;;  %v947_v18 = vpack.c.bf16 %v924_v61, %v923_v5  ;;  %vm721_vm6 = vcmp.gt.f32.partialorder %v2573_v27, 0.0 }
 0x26c   :  { %1960 = vpow2.f32 %v869_v50  ;;  %v849_v59 = vsub.f32 0.0, %v2587_v51  ;;  %v818_v58 = vmax.f32 %v665_v36, 0.0  ;;  %v668_v60 = vpop.f32.mrb[16].mxu1  ;;  %1868 = vmatpush3.bf16.msra.mxu1 %v2593_v63  ;;  %v798_v28 = vsel %vm718_vm3, %v2547_v53, %v1639_v39 }
 0x26d   :  { %v761_v62 = vmul.f32 1.442695, %v738_v55  ;;  %v2596_v2 = vadd.f32 %v668_v60, %v2519_v21  ;;  %v670_v3 = vpop.f32.mrb[17].mxu1  ;;  %1962 = vpow2.f32 %v759_v54  ;;  %1700 = vmatprep.subr.bf16.mxu0 %v947_v18  ;;  %vm722_vm7 = vcmp.gt.f32.partialorder %v2584_v46, 0.0 }
 0x26e   :  { %v1951_v38 = vpop.eup %1950  ;;  %v871_v6 = vmul.f32 1.442695, %v849_v59  ;;  %v2599_v7 = vadd.f32 1e-06, %v818_v58  ;;  %v671_v8 = vadd.f32 %v670_v3, %v2523_v22  ;;  %1701 = vmatpush3.bf16.msra.mxu0 %v947_v18 }
 0x26f   :  { %v739_v40 = vmin.f32 %v2596_v2, 0.0  ;;  %v1953_v9 = vpop.eup %1952  ;;  %v910_v12 = vmul.f32 %v1951_v38, %v2557_v4  ;;  %1964 = vpow2.f32 %v761_v62  ;;  %vm723_vm8 = vcmp.gt.f32.partialorder %v2596_v2, 0.0 }
 0x270   :  { %v850_v14 = vsub.f32 0.0, %v2599_v7  ;;  %v819_v13 = vmax.f32 %v671_v8, 0.0  ;;  %v674_v16 = vpop.f32.mrb[18].mxu1  ;;  %v1955_v17 = vpop.eup %1954  ;;  %1966 = vpow2.f32 %v871_v6  ;;  %v909_v26 = vmul.f32 %v1953_v9, %v2549_v56 }
 0x271   :  { %v763_v0 = vmul.f32 1.442695, %v739_v40  ;;  %v2612_v19 = vadd.f32 %v674_v16, %v2519_v21  ;;  %v676_v20 = vpop.f32.mrb[19].mxu1  ;;  %v1957_v4 = vpop.eup %1956  ;;  %v1640_v30 = vadd.f32 -1.0, %v1955_v17  ;;  %v926_v37 = vmul.f32 %v1951_v38, %v910_v12 }
 0x272   :  { %v873_v23 = vmul.f32 1.442695, %v850_v14  ;;  %v2614_v24 = vadd.f32 1e-06, %v819_v13  ;;  %v677_v44 = vadd.f32 %v676_v20, %v2523_v22  ;;  %v1959_v33 = vpop.eup %1958  ;;  %v893_v42 = vmul.f32 %v1953_v9, %v797_v10 }
 0x273   :  { %1968 = vpow2.f32 %v763_v0  ;;  %v740_v29 = vmin.f32 %v2612_v19, 0.0  ;;  %v894_v56 = vmul.f32 %v1951_v38, %v798_v28  ;;  %v1641_v53 = vadd.f32 -1.0, %v1957_v4 }
 0x274   :  { %1970 = vpow2.f32 %v873_v23  ;;  %v851_v25 = vsub.f32 0.0, %v2614_v24  ;;  %v820_v35 = vmax.f32 %v677_v44, 0.0  ;;  %v680_v32 = vpop.f32.mrb[20].mxu1  ;;  %v925_v50 = vmul.f32 %v1953_v9, %v909_v26 }
 0x275   :  { %v765_v41 = vmul.f32 1.442695, %v740_v29  ;;  %v682_v43 = vpop.f32.mrb[21].mxu1  ;;  %v2627_v49 = vadd.f32 %v680_v32, %v2519_v21  ;;  %v2629_v52 = vpack.c.bf16 %v894_v56, %v893_v42  ;;  %v799_v55 = vsel %vm719_vm4, %v2555_v1, %v1640_v30 }
 0x276   :  { %v1961_v45 = vpop.eup %1960  ;;  %v2624_v48 = vadd.f32 1e-06, %v820_v35  ;;  %v875_v36 = vmul.f32 1.442695, %v851_v25  ;;  %v683_v54 = vadd.f32 %v682_v43, %v2523_v22  ;;  %v911_v47 = vmul.f32 %v1959_v33, %v2566_v15 }
 0x277   :  { %1972 = vpow2.f32 %v765_v41  ;;  %v1963_v58 = vpop.eup %1962  ;;  %v912_v60 = vmul.f32 %v1961_v45, %v2575_v31  ;;  %1861 = vmatprep.subr.bf16.mxu1 %v2629_v52  ;;  %v741_v61 = vmin.f32 %v2627_v49, 0.0  ;;  %v948_v3 = vpack.c.bf16 %v926_v37, %v925_v50 }
 0x278   :  { %v852_v57 = vsub.f32 0.0, %v2624_v48  ;;  %v686_v59 = vpop.f32.mrb[22].mxu1  ;;  %v821_v62 = vmax.f32 %v683_v54, 0.0  ;;  %v800_v15 = vsel %vm720_vm5, %v2564_v11, %v1641_v53  ;;  %1869 = vmatpush3.bf16.msra.mxu1 %v2629_v52  ;;  %1974 = vpow2.f32 %v875_v36 }
 0x279   :  { %v688_v1 = vpop.f32.mrb[23].mxu1  ;;  %v2647_v6 = vadd.f32 %v686_v59, %v2519_v21  ;;  %v1965_v8 = vpop.eup %1964  ;;  %v767_v5 = vmul.f32 1.442695, %v741_v61  ;;  %1702 = vmatprep.subr.bf16.mxu0 %v948_v3  ;;  %v895_v40 = vmul.f32 %v1959_v33, %v799_v55  ;;  %v927_v10 = vmul.f32 %v1959_v33, %v911_v47 }
 0x27a   :  { %v877_v38 = vmul.f32 1.442695, %v852_v57  ;;  %v689_v31 = vadd.f32 %v688_v1, %v2523_v22  ;;  %v2651_v39 = vadd.f32 1e-06, %v821_v62  ;;  %v1967_v9 = vpop.eup %1966  ;;  %v1642_v11 = vadd.f32 -1.0, %v1963_v58  ;;  %1703 = vmatpush3.bf16.msra.mxu0 %v948_v3 }
 0x27b   :  { %v742_v12 = vmin.f32 %v2647_v6, 0.0  ;;  %v928_v16 = vmul.f32 %v1961_v45, %v912_v60  ;;  %v1643_v23 = vadd.f32 -1.0, %v1965_v8  ;;  %v896_v4 = vmul.f32 %v1961_v45, %v800_v15 }
 0x27c   :  { %1976 = vpow2.f32 %v877_v38  ;;  %v692_v14 = vpop.f32.mrb[24].mxu1  ;;  %v853_v17 = vsub.f32 0.0, %v2651_v39  ;;  %v822_v0 = vmax.f32 %v689_v31, 0.0  ;;  %v913_v28 = vmul.f32 %v1967_v9, %v2587_v51 }
 0x27d   :  { %v1969_v13 = vpop.eup %1968  ;;  %1978 = vpow2.f32 %v767_v5  ;;  %v694_v18 = vpop.f32.mrb[25].mxu1  ;;  %v769_v44 = vmul.f32 1.442695, %v742_v12  ;;  %v2656_v26 = vadd.f32 %v692_v14, %v2519_v21  ;;  %vm724_vm9 = vcmp.gt.f32.partialorder %v2612_v19, 0.0 }
 0x27e   :  { %v1971_v20 = vpop.eup %1970  ;;  %v879_v29 = vmul.f32 1.442695, %v853_v17  ;;  %v2659_v30 = vadd.f32 1e-06, %v822_v0  ;;  %v695_v25 = vadd.f32 %v694_v18, %v2523_v22  ;;  %v1644_v32 = vadd.f32 -1.0, %v1969_v13 }
 0x27f   :  { %v914_v35 = vmul.f32 %v1971_v20, %v2599_v7  ;;  %1980 = vpow2.f32 %v769_v44  ;;  %v2664_v33 = vpack.c.bf16 %v896_v4, %v895_v40  ;;  %v801_v41 = vsel %vm721_vm6, %v2573_v27, %v1642_v11 }
 0x280   :  { %v698_v37 = vpop.f32.mrb[26].mxu1  ;;  %1982 = vpow2.f32 %v879_v29  ;;  %v854_v51 = vsub.f32 0.0, %v2659_v30  ;;  %v743_v42 = vmin.f32 %v2656_v26, 0.0  ;;  %v802_v7 = vsel %vm722_vm7, %v2584_v46, %v1643_v23 }
 0x281   :  { %v700_v56 = vpop.f32.mrb[27].mxu1  ;;  %v1973_v43 = vpop.eup %1972  ;;  %1862 = vmatprep.subr.bf16.mxu1 %v2664_v33  ;;  %v823_v45 = vmax.f32 %v695_v25, 0.0  ;;  %v949_v53 = vpack.c.bf16 %v928_v16, %v927_v10  ;;  %v2676_v50 = vadd.f32 %v698_v37, %v2519_v21  ;;  %v929_v36 = vmul.f32 %v1967_v9, %v913_v28 }
 0x282   :  { %v881_v27 = vmul.f32 1.442695, %v854_v51  ;;  %v771_v54 = vmul.f32 1.442695, %v743_v42  ;;  %1870 = vmatpush3.bf16.msra.mxu1 %v2664_v33  ;;  %v701_v55 = vadd.f32 %v700_v56, %v2523_v22  ;;  %v930_v47 = vmul.f32 %v1971_v20, %v914_v35  ;;  %v1975_v60 = vpop.eup %1974 }
 0x283   :  { %v803_v57 = vsel %vm723_vm8, %v2596_v2, %v1644_v32  ;;  %vm725_vm10 = vcmp.gt.f32.partialorder %v2627_v49, 0.0  ;;  %v2684_v46 = vadd.f32 1e-06, %v823_v45  ;;  %1704 = vmatprep.subr.bf16.mxu0 %v949_v53  ;;  %v744_v59 = vmin.f32 %v2676_v50, 0.0 }
 0x284   :  { %v704_v58 = vpop.f32.mrb[28].mxu1  ;;  %v1645_v61 = vadd.f32 -1.0, %v1973_v43  ;;  %vm726_vm11 = vcmp.gt.f32.partialorder %v2647_v6, 0.0  ;;  %1984 = vpow2.f32 %v881_v27  ;;  %1705 = vmatpush3.bf16.msra.mxu0 %v949_v53  ;;  %v824_v62 = vmax.f32 %v701_v55, 0.0 }
 0x285   :  { %v897_v3 = vmul.f32 %v1967_v9, %v801_v41  ;;  %v706_v1 = vpop.f32.mrb[29].mxu1  ;;  %1986 = vpow2.f32 %v771_v54  ;;  %v855_v2 = vsub.f32 0.0, %v2684_v46  ;;  %v773_v38 = vmul.f32 1.442695, %v744_v59 }
 0x286   :  { %v1977_v15 = vpop.eup %1976  ;;  %v898_v31 = vmul.f32 %v1971_v20, %v802_v7  ;;  %v2690_v40 = vadd.f32 1e-06, %v824_v62  ;;  %v2693_v10 = vadd.f32 %v704_v58, %v2519_v21  ;;  %v707_v11 = vadd.f32 %v706_v1, %v2523_v22 }
 0x287   :  { %v1979_v8 = vpop.eup %1978  ;;  %v916_v5 = vmul.f32 %v1977_v15, %v2624_v48  ;;  %v915_v12 = vmul.f32 %v1975_v60, %v2614_v24  ;;  %v883_v9 = vmul.f32 1.442695, %v855_v2  ;;  %1988 = vpow2.f32 %v773_v38 }
 0x288   :  { %v2697_v14 = vpack.c.bf16 %v898_v31, %v897_v3  ;;  %v710_v13 = vpop.f32.mrb[30].mxu1  ;;  %v804_v16 = vsel %vm724_vm9, %v2612_v19, %v1645_v61  ;;  %v1646_v17 = vadd.f32 -1.0, %v1979_v8  ;;  %v856_v48 = vsub.f32 0.0, %v2690_v40 }
 0x289   :  { %v745_v0 = vmin.f32 %v2693_v10, 0.0  ;;  %v712_v18 = vpop.f32.mrb[31].mxu1  ;;  %v1981_v20 = vpop.eup %1980  ;;  %v932_v23 = vmul.f32 %v1977_v15, %v916_v5  ;;  %1990 = vpow2.f32 %v883_v9  ;;  %v825_v24 = vmax.f32 %v707_v11, 0.0 }
 0x28a   :  { %1863 = vmatprep.subr.bf16.mxu1 %v2697_v14  ;;  %v950_v44 = vpack.c.bf16 %v930_v47, %v929_v36  ;;  %v1983_v4 = vpop.eup %1982  ;;  %v1647_v28 = vadd.f32 -1.0, %v1981_v20  ;;  %v885_v29 = vmul.f32 1.442695, %v856_v48  ;;  %v2707_v19 = vadd.f32 %v710_v13, %v2519_v21 }
 0x28b   :  { %v775_v25 = vmul.f32 1.442695, %v745_v0  ;;  %1871 = vmatpush3.bf16.msra.mxu1 %v2697_v14  ;;  %v931_v35 = vmul.f32 %v1975_v60, %v915_v12  ;;  %v2709_v32 = vadd.f32 1e-06, %v825_v24  ;;  %v713_v37 = vadd.f32 %v712_v18, %v2523_v22 }
 0x28c   :  { %1706 = vmatprep.subr.bf16.mxu0 %v950_v44  ;;  %v899_v41 = vmul.f32 %v1975_v60, %v803_v57  ;;  %v805_v51 = vsel %vm725_vm10, %v2627_v49, %v1646_v17  ;;  %v917_v42 = vmul.f32 %v1983_v4, %v2651_v39  ;;  %1992 = vpow2.f32 %v885_v29 }
 0x28d   :  { %1707 = vmatpush3.bf16.msra.mxu0 %v950_v44  ;;  %v746_v56 = vmin.f32 %v2707_v19, 0.0  ;;  %v806_v21 = vsel %vm726_vm11, %v2647_v6, %v1647_v28  ;;  %1994 = vpow2.f32 %v775_v25  ;;  %v857_v43 = vsub.f32 0.0, %v2709_v32 }
 0x28e   :  { %v826_v7 = vmax.f32 %v713_v37, 0.0  ;;  %v1985_v22 = vpop.eup %1984  ;;  %v900_v53 = vmul.f32 %v1977_v15, %v804_v16  ;;  %v951_v36 = vpack.c.bf16 %v932_v23, %v931_v35  ;;  %v901_v27 = vmul.f32 %v1983_v4, %v805_v51  ;;  %v1901_v35 = vld [vmem:[#allocation5 + $0x28] sm:$0xff]   ;;  %v1904_v37 = vld [vmem:[#allocation5 + $0x30] sm:$0xff]   ;;  %v1893_v51 = vld [vmem:[#allocation7 + $0x18] sm:$0xff]  }
 0x28f   :  { %v777_v45 = vmul.f32 1.442695, %v746_v56  ;;  %v1987_v49 = vpop.eup %1986  ;;  %v918_v39 = vmul.f32 %v1985_v22, %v2659_v30  ;;  %v887_v54 = vmul.f32 1.442695, %v857_v43  ;;  %v902_v47 = vmul.f32 %v1985_v22, %v806_v21  ;;  %v1895_v56 = vld [vmem:[#allocation7 + $0x28] sm:$0xff]   ;;  %v1898_v21 = vld [vmem:[#allocation5] sm:$0xff]  }
 0x290   :  { %v842_v55 = vadd.f32 1e-06, %v826_v7  ;;  %v933_v57 = vmul.f32 %v1983_v4, %v917_v42  ;;  %v1648_v59 = vadd.f32 -1.0, %v1987_v49  ;;  %v2722_v58 = vpack.c.bf16 %v900_v53, %v899_v41  ;;  %1708 = vmatprep.subr.bf16.mxu0 %v951_v36  ;;  %v1891_v41 = vld [vmem:[#allocation7 + $0x8] sm:$0xff]   ;;  %v1894_v42 = vld [vmem:[#allocation7 + $0x20] sm:$0xff]   ;;  %v1903_v43 = vld [vmem:[#allocation5 + $0x18] sm:$0xff]  }
 0x291   :  { %1996 = vpow2.f32 %v777_v45  ;;  %v1989_v6 = vpop.eup %1988  ;;  %v934_v60 = vmul.f32 %v1985_v22, %v918_v39  ;;  %1709 = vmatpush3.bf16.msra.mxu0 %v951_v36  ;;  %v2724_v62 = vpack.c.bf16 %v902_v47, %v901_v27  ;;  %vm727_vm12 = vcmp.gt.f32.partialorder %v2656_v26, 0.0 }
 0x292   :  { %1998 = vpow2.f32 %v887_v54  ;;  %v858_v61 = vsub.f32 0.0, %v842_v55  ;;  %v1649_v3 = vadd.f32 -1.0, %v1989_v6  ;;  %1864 = vmatprep.subr.bf16.mxu1 %v2722_v58  ;;  %v807_v1 = vsel %vm727_vm12, %v2656_v26, %v1648_v59 }
 0x293   :  { %v1991_v30 = vpop.eup %1990  ;;  %1872 = vmatpush3.bf16.msra.mxu1 %v2722_v58  ;;  %v952_v2 = vpack.c.bf16 %v934_v60, %v933_v57  ;;  %vm728_vm13 = vcmp.gt.f32.partialorder %v2676_v50, 0.0  ;;  %vm729_vm14 = vcmp.gt.f32.partialorder %v2693_v10, 0.0  ;;  %vm730_vm15 = vcmp.gt.f32.partialorder %v2707_v19, 0.0 }
 0x294   :  { %v889_v15 = vmul.f32 1.442695, %v858_v61  ;;  %1865 = vmatprep.subr.bf16.mxu1 %v2724_v62  ;;  %v903_v38 = vmul.f32 %v1991_v30, %v807_v1  ;;  %v919_v31 = vmul.f32 %v1991_v30, %v2684_v46  ;;  %v808_v5 = vsel %vm728_vm13, %v2676_v50, %v1649_v3 }
 0x295   :  { %1710 = vmatprep.subr.bf16.mxu0 %v952_v2  ;;  %v2778_v6 = vand.u32 127, %v195_v34 }
 0x296   :  { %2000 = vpow2.f32 %v889_v15  ;;  %v1993_v8 = vpop.eup %1992  ;;  %1711 = vmatpush3.bf16.msra.mxu0 %v952_v2  ;;  %v935_v13 = vmul.f32 %v1991_v30, %v919_v31 }
 0x297   :  { %v1995_v11 = vpop.eup %1994  ;;  %v920_v26 = vmul.f32 %v1993_v8, %v2690_v40  ;;  %1873 = vmatpush3.bf16.msra.mxu1 %v2724_v62  ;;  %v904_v12 = vmul.f32 %v1993_v8, %v808_v5 }
 0x298   :  { %v1650_v9 = vadd.f32 -1.0, %v1995_v11 }
 0x299   :  { %v936_v16 = vmul.f32 %v1993_v8, %v920_v26  ;;  %v945_v17 = vpack.c.bf16 %v904_v12, %v903_v38 }
 0x29a   :  { %v809_v0 = vsel %vm729_vm14, %v2693_v10, %v1650_v9 }
 0x29b   :  { %v1997_v48 = vpop.eup %1996  ;;  %1866 = vmatprep.subr.bf16.mxu1 %v945_v17  ;;  %v953_v50 = vpack.c.bf16 %v936_v16, %v935_v13 }
 0x29c   :  { %v1999_v46 = vpop.eup %1998  ;;  %v1651_v18 = vadd.f32 -1.0, %v1997_v48  ;;  %1874 = vmatpush3.bf16.msra.mxu1 %v945_v17 }
 0x29d   :  { %v905_v20 = vmul.f32 %v1999_v46, %v809_v0  ;;  %1712 = vmatprep.subr.bf16.mxu0 %v953_v50  ;;  %v921_v40 = vmul.f32 %v1999_v46, %v2709_v32  ;;  %v1892_v32 = vld [vmem:[#allocation7 + $0x10] sm:$0xff]  }
 0x29e   :  { %1713 = vmatpush3.bf16.msra.mxu0 %v953_v50  ;;  %v810_v24 = vsel %vm730_vm15, %v2707_v19, %v1651_v18  ;;  %v1905_v19 = vld [vmem:[#allocation5 + $0x38] sm:$0xff]   ;;  %v1102_v0 = vld [vmem:[#allocation8 + $0x10] sm:$0xff]  ;;  %v1100_v50 = vld [vmem:[#allocation8] sm:$0xff] }
 0x29f   :  { %v937_v28 = vmul.f32 %v1999_v46, %v921_v40 }
 0x2a0   :  { %v2001_v23 = vpop.eup %2000 }
 0x2a1   :  { %v922_v44 = vmul.f32 %v2001_v23, %v842_v55  ;;  %v906_v4 = vmul.f32 %v2001_v23, %v810_v24  ;;  %v1103_v24 = vld [vmem:[#allocation8 + $0x18] sm:$0xff] }
 0x2a3   :  { %v938_v29 = vmul.f32 %v2001_v23, %v922_v44  ;;  %v946_v25 = vpack.c.bf16 %v906_v4, %v905_v20 }
 0x2a5   :  { %1867 = vmatprep.subr.bf16.mxu1 %v946_v25  ;;  %v954_v10 = vpack.c.bf16 %v938_v29, %v937_v28 }
 0x2a6   :  { %1875 = vmatpush3.bf16.msra.mxu1 %v946_v25 }
 0x2a7   :  { %1714 = vmatprep.subr.bf16.mxu0 %v954_v10 }
 0x2a8   :  { %1715 = vmatpush3.bf16.msra.mxu0 %v954_v10 }
 0x2a9   :  { %1732 = vmatprep.subr.bf16.mxu0 %v2593_v63  ;;  %1757 = vmatmul.mubr.bf16.vlgmr.msra.gmra.mrb[32].mxu1 %v1901_v35 }
 0x2aa   :  { %1760 = vmatprep.mubr.bf16.mxu1 %v1904_v37 }
 0x2ab   :  { %1717 = vmatmul.mubr.bf16.vlgmr.msra.gmra.mrb[32].mxu0 %v1891_v41 }
 0x2ac   :  { %1733 = vmatpush3.bf16.msra.mxu0 %v2593_v63  ;;  %1720 = vmatprep.mubr.bf16.mxu0 %v1892_v32  ;;  %v1896_v63 = vld [vmem:[#allocation7 + $0x30] sm:$0xff]  }
 0x2ad   :  { %1734 = vmatprep.subr.bf16.mxu0 %v2629_v52 }
 0x2b0   :  { %1735 = vmatpush3.bf16.msra.mxu0 %v2629_v52  ;;  %v1897_v52 = vld [vmem:[#allocation7 + $0x38] sm:$0xff]  }
 0x2b1   :  { %1736 = vmatprep.subr.bf16.mxu0 %v2664_v33  ;;  %1761 = vmatmul.mubr.bf16.gmra.mrb[36].mxu1 %v1905_v19 }
 0x2b3   :  { %1721 = vmatmul.mubr.bf16.gmra.mrb[36].mxu0 %v1893_v51 }
 0x2b4   :  { %1737 = vmatpush3.bf16.msra.mxu0 %v2664_v33  ;;  %1724 = vmatprep.mubr.bf16.mxu0 %v1894_v42  ;;  %v1899_v33 = vld [vmem:[#allocation5 + $0x8] sm:$0xff]  }
 0x2b5   :  { %1738 = vmatprep.subr.bf16.mxu0 %v2697_v14 }
 0x2b8   :  { %1739 = vmatpush3.bf16.msra.mxu0 %v2697_v14  ;;  %v1902_v14 = vld [vmem:[#allocation5 + $0x10] sm:$0xff]  }
 0x2b9   :  { %1740 = vmatprep.subr.bf16.mxu0 %v2722_v58 }
 0x2bb   :  { %1725 = vmatmul.mubr.bf16.gmra.mrb[40].mxu0 %v1895_v56 }
 0x2bc   :  { %1741 = vmatpush3.bf16.msra.mxu0 %v2722_v58  ;;  %1728 = vmatprep.mubr.bf16.mxu0 %v1896_v63  ;;  %v1101_v63 = vld [vmem:[#allocation8 + $0x8] sm:$0xff] }
 0x2bd   :  { %1742 = vmatprep.subr.bf16.mxu0 %v2724_v62 }
 0x2c0   :  { %1743 = vmatpush3.bf16.msra.mxu0 %v2724_v62 }
 0x2c1   :  { %1744 = vmatprep.subr.bf16.mxu0 %v945_v17 }
 0x2c3   :  { %1729 = vmatmul.mubr.bf16.gmra.mrb[44].mxu0 %v1897_v52 }
 0x2c4   :  { %1745 = vmatpush3.bf16.msra.mxu0 %v945_v17  ;;  %1748 = vmatprep.mubr.bf16.mxu0 %v1898_v21 }
 0x2c5   :  { %1746 = vmatprep.subr.bf16.mxu0 %v946_v25 }
 0x2c8   :  { %1747 = vmatpush3.bf16.msra.mxu0 %v946_v25 }
 0x2cb   :  { %1749 = vmatmul.mubr.bf16.vlgmr.msra.gmra.mrb[48].mxu0 %v1899_v33 }
 0x2cc   :  { %1752 = vmatprep.mubr.bf16.mxu0 %v1902_v14 }
 0x2d3   :  { %1753 = vmatmul.mubr.bf16.gmra.mrb[52].mxu0 %v1903_v43  ;;  %v1106_v43 = vld [vmem:[#allocation8 + $0x30] sm:$0xff] }
 0x37c   :  { %v2753_v7 = vpop.f32.mrb[32].mxu1 }
 0x37d   :  { %v2755_v22 = vpop.f32.mrb[33].mxu1 }
 0x37e   :  { %v1718_v45 = vpop.f32.mrb[32].mxu0  ;;  %v2757_v53 = vpop.f32.mrb[34].mxu1 }
 0x37f   :  { %2002 = vrsqrt.f32 %v1718_v45  ;;  %v1037_v36 = vpop.f32.mrb[33].mxu0  ;;  %v2759_v27 = vpop.f32.mrb[35].mxu1  ;;  %vm1132_vm0 = vcmp.eq.f32.partialorder %v1718_v45, inf  ;;  %vm1134_vm1 = vcmp.eq.f32.partialorder %v1718_v45, 0.0  ;;  %v1135_v3 = vand.u32 2147483648, %v1718_v45 }
 0x380   :  { %2004 = vrsqrt.f32 %v1037_v36  ;;  %v1719_v49 = vpop.f32.mrb[34].mxu0  ;;  %vm1118_vm2 = vcmp.eq.f32.partialorder %v1037_v36, inf  ;;  %vm1120_vm3 = vcmp.eq.f32.partialorder %v1037_v36, 0.0  ;;  %v1121_v2 = vand.u32 2147483648, %v1037_v36 }
 0x381   :  { %2006 = vrsqrt.f32 %v1719_v49  ;;  %v2761_v39 = vpop.f32.mrb[35].mxu0  ;;  %vm1139_vm4 = vcmp.eq.f32.partialorder %v1719_v49, inf  ;;  %vm1141_vm5 = vcmp.eq.f32.partialorder %v1719_v49, 0.0  ;;  %v1142_v8 = vand.u32 2147483648, %v1719_v49 }
 0x382   :  { %2008 = vrsqrt.f32 %v2761_v39  ;;  %vm1125_vm6 = vcmp.eq.f32.partialorder %v2761_v39, inf  ;;  %vm1127_vm7 = vcmp.eq.f32.partialorder %v2761_v39, 0.0  ;;  %v1128_v26 = vand.u32 2147483648, %v2761_v39 }
 0x384   :  { %v2764_v54 = vpop.f32.mrb[36].mxu1 }
 0x385   :  { %v2766_v55 = vpop.f32.mrb[37].mxu1 }
 0x386   :  { %v2768_v47 = vpop.f32.mrb[36].mxu0  ;;  %v2770_v57 = vpop.f32.mrb[38].mxu1 }
 0x387   :  { %2010 = vrsqrt.f32 %v2768_v47  ;;  %v2773_v59 = vpop.f32.mrb[37].mxu0  ;;  %v2775_v58 = vpop.f32.mrb[39].mxu1  ;;  %vm1160_vm8 = vcmp.eq.f32.partialorder %v2768_v47, inf  ;;  %vm1162_vm9 = vcmp.eq.f32.partialorder %v2768_v47, 0.0  ;;  %v1163_v16 = vand.u32 2147483648, %v2768_v47 }
 0x388   :  { %2012 = vrsqrt.f32 %v2773_v59  ;;  %v2781_v60 = vpop.f32.mrb[38].mxu0  ;;  %vm1146_vm10 = vcmp.eq.f32.partialorder %v2773_v59, inf  ;;  %vm1148_vm11 = vcmp.eq.f32.partialorder %v2773_v59, 0.0  ;;  %v1149_v48 = vand.u32 2147483648, %v2773_v59 }
 0x389   :  { %v2003_v61 = vpop.eup %2002  ;;  %2014 = vrsqrt.f32 %v2781_v60  ;;  %v2784_v62 = vpop.f32.mrb[39].mxu0  ;;  %vm1167_vm12 = vcmp.eq.f32.partialorder %v2781_v60, inf  ;;  %vm1169_vm13 = vcmp.eq.f32.partialorder %v2781_v60, 0.0  ;;  %v1170_v4 = vand.u32 2147483648, %v2781_v60 }
 0x38a   :  { %v2005_v30 = vpop.eup %2004  ;;  %2016 = vrsqrt.f32 %v2784_v62  ;;  %v1131_v1 = vmul.f32 %v2003_v61, %v1718_v45  ;;  %vm1153_vm14 = vcmp.eq.f32.partialorder %v2784_v62, inf  ;;  %v1156_v25 = vand.u32 2147483648, %v2784_v62  ;;  %v1104_v61 = vld [vmem:[#allocation8 + $0x20] sm:$0xff] }
 0x38b   :  { %v2007_v34 = vpop.eup %2006  ;;  %v1117_v15 = vmul.f32 %v2005_v30, %v1037_v36 }
 0x38c   :  { %v2009_v38 = vpop.eup %2008  ;;  %v1138_v31 = vmul.f32 %v2007_v34, %v1719_v49  ;;  %v1133_v5 = vsel %vm1132_vm0, %v1718_v45, %v1131_v1  ;;  %vm1155_vm0 = vcmp.eq.f32.partialorder %v2784_v62, 0.0 }
 0x38d   :  { %v1119_v11 = vsel %vm1118_vm2, %v1037_v36, %v1117_v15  ;;  %v1124_v13 = vmul.f32 %v2009_v38, %v2761_v39  ;;  %v1136_v18 = vsel %vm1134_vm1, %v1135_v3, %v1133_v5  ;;  %v1107_v15 = vld [vmem:[#allocation8 + $0x38] sm:$0xff] }
 0x38e   :  { %v2792_v12 = vpop.f32.mrb[40].mxu0  ;;  %v1140_v9 = vsel %vm1139_vm4, %v1719_v49, %v1138_v31  ;;  %v1122_v20 = vsel %vm1120_vm3, %v1121_v2, %v1119_v11  ;;  %v2821_v35 = vmul.f32 %v1136_v18, %v1102_v0 }
 0x38f   :  { %2018 = vrsqrt.f32 %v2792_v12  ;;  %v2798_v17 = vpop.f32.mrb[41].mxu0  ;;  %v1143_v44 = vsel %vm1141_vm5, %v1142_v8, %v1140_v9  ;;  %v1126_v29 = vsel %vm1125_vm6, %v2761_v39, %v1124_v13  ;;  %v2823_v37 = vmul.f32 %v1122_v20, %v1100_v50  ;;  %v1105_v9 = vld [vmem:[#allocation8 + $0x28] sm:$0xff] }
 0x390   :  { %2020 = vrsqrt.f32 %v2798_v17  ;;  %v2804_v46 = vpop.f32.mrb[42].mxu0  ;;  %vm1188_vm15 = vcmp.eq.f32.partialorder %v2792_v12, inf  ;;  %v1191_v41 = vand.u32 2147483648, %v2792_v12  ;;  %vm1190_vm1 = vcmp.eq.f32.partialorder %v2792_v12, 0.0 }
 0x391   :  { %v2011_v40 = vpop.eup %2010  ;;  %2022 = vrsqrt.f32 %v2804_v46  ;;  %v2810_v23 = vpop.f32.mrb[43].mxu0  ;;  %v2829_v19 = vmul.f32 %v1143_v44, %v1103_v24  ;;  %vm1174_vm2 = vcmp.eq.f32.partialorder %v2798_v17, inf  ;;  %vm1176_vm3 = vcmp.eq.f32.partialorder %v2798_v17, 0.0 }
 0x392   :  { %v2013_v28 = vpop.eup %2012  ;;  %2024 = vrsqrt.f32 %v2810_v23  ;;  %v1159_v51 = vmul.f32 %v2011_v40, %v2768_v47  ;;  %v1177_v56 = vand.u32 2147483648, %v2798_v17  ;;  %v1129_v52 = vsel %vm1127_vm7, %v1128_v26, %v1126_v29  ;;  %v1108_v40 = vld [vmem:[#allocation8 + $0x40] sm:$0xff] }
 0x393   :  { %v2015_v10 = vpop.eup %2014  ;;  %v1145_v42 = vmul.f32 %v2013_v28, %v2773_v59  ;;  %vm1195_vm4 = vcmp.eq.f32.partialorder %v2804_v46, inf  ;;  %vm1391_vm5 = vcmp.lt.s32.totalorder %v2778_v6, 16  ;;  %vm1197_vm6 = vcmp.eq.f32.partialorder %v2804_v46, 0.0 }
 0x394   :  { %v2017_v32 = vpop.eup %2016  ;;  %v1166_v21 = vmul.f32 %v2015_v10, %v2781_v60  ;;  %v1198_v14 = vand.u32 2147483648, %v2804_v46  ;;  %v1161_v45 = vsel %vm1160_vm8, %v2768_v47, %v1159_v51  ;;  %v1229_v34 = vmul.f32 %v1129_v52, %v1101_v63  ;;  %v1111_v10 = vld [vmem:[#allocation8 + $0x58] sm:$0xff] }
 0x395   :  { %v1147_v36 = vsel %vm1146_vm10, %v2773_v59, %v1145_v42  ;;  %v1164_v39 = vsel %vm1162_vm9, %v1163_v16, %v1161_v45  ;;  %v1152_v30 = vmul.f32 %v2017_v32, %v2784_v62  ;;  %vm1181_vm7 = vcmp.eq.f32.partialorder %v2810_v23, inf  ;;  %v1110_v16 = vld [vmem:[#allocation8 + $0x50] sm:$0xff] }
 0x396   :  { %v2841_v33 = vpop.f32.mrb[44].mxu0  ;;  %v1150_v3 = vsel %vm1148_vm11, %v1149_v48, %v1147_v36  ;;  %vm1183_vm8 = vcmp.eq.f32.partialorder %v2810_v23, 0.0  ;;  %v1184_v59 = vand.u32 2147483648, %v2810_v23  ;;  %v2868_v38 = vmul.f32 %v1164_v39, %v1106_v43 }
 0x397   :  { %2026 = vrsqrt.f32 %v2841_v33  ;;  %v2852_v49 = vpop.f32.mrb[45].mxu0  ;;  %v1168_v31 = vsel %vm1167_vm12, %v2781_v60, %v1166_v21  ;;  %v2875_v11 = vmul.f32 %v1150_v3, %v1104_v61  ;;  %vm1216_vm9 = vcmp.eq.f32.partialorder %v2841_v33, inf }
 0x398   :  { %2028 = vrsqrt.f32 %v2852_v49  ;;  %v2860_v1 = vpop.f32.mrb[46].mxu0  ;;  %v1171_v26 = vsel %vm1169_vm13, %v1170_v4, %v1168_v31  ;;  %v1219_v0 = vand.u32 2147483648, %v2841_v33  ;;  %v1154_v50 = vsel %vm1153_vm14, %v2784_v62, %v1152_v30 }
 0x399   :  { %v2019_v2 = vpop.eup %2018  ;;  %2030 = vrsqrt.f32 %v2860_v1  ;;  %v2865_v47 = vpop.f32.mrb[47].mxu0  ;;  %v2882_v18 = vmul.f32 %v1171_v26, %v1107_v15  ;;  %vm1218_vm10 = vcmp.eq.f32.partialorder %v2841_v33, 0.0  ;;  %vm1202_vm11 = vcmp.eq.f32.partialorder %v2852_v49, inf }
 0x39a   :  { %v2021_v8 = vpop.eup %2020  ;;  %2032 = vrsqrt.f32 %v2865_v47  ;;  %v1187_v5 = vmul.f32 %v2019_v2, %v2792_v12  ;;  %v1205_v44 = vand.u32 2147483648, %v2852_v49  ;;  %v1157_v4 = vsel %vm1155_vm0, %v1156_v25, %v1154_v50  ;;  %v1109_v25 = vld [vmem:[#allocation8 + $0x48] sm:$0xff]  ;;  %v1115_v50 = vld [vmem:[#allocation8 + $0x78] sm:$0xff] }
 0x39b   :  { %v2023_v13 = vpop.eup %2022  ;;  %v1173_v48 = vmul.f32 %v2021_v8, %v2798_v17  ;;  %vm1204_vm12 = vcmp.eq.f32.partialorder %v2852_v49, 0.0  ;;  %v2905_v51 = vmul.f32 %v1157_v4, %v1105_v9  ;;  %vm1223_vm13 = vcmp.eq.f32.partialorder %v2860_v1, inf  ;;  %v1112_v9 = vld [vmem:[#allocation8 + $0x60] sm:$0xff] }
 0x39c   :  { %v2025_v20 = vpop.eup %2024  ;;  %v1189_v60 = vsel %vm1188_vm15, %v2792_v12, %v1187_v5  ;;  %v1194_v24 = vmul.f32 %v2023_v13, %v2804_v46  ;;  %vm1225_vm14 = vcmp.eq.f32.partialorder %v2860_v1, 0.0  ;;  %v1226_v13 = vand.u32 2147483648, %v2860_v1 }
 0x39d   :  { %v1192_v28 = vsel %vm1190_vm1, %v1191_v41, %v1189_v60  ;;  %v1175_v29 = vsel %vm1174_vm2, %v2798_v17, %v1173_v48  ;;  %v1180_v32 = vmul.f32 %v2025_v20, %v2810_v23  ;;  %vm1209_vm15 = vcmp.eq.f32.partialorder %v2865_v47, inf }
 0x39e   :  { %v1750_v42 = vpop.f32.mrb[48].mxu0  ;;  %v1238_v63 = vmul.f32 %v1192_v28, %v1110_v16  ;;  %v1178_v62 = vsel %vm1176_vm3, %v1177_v56, %v1175_v29  ;;  %v1196_v12 = vsel %vm1195_vm4, %v2804_v46, %v1194_v24  ;;  %vm1211_vm0 = vcmp.eq.f32.partialorder %v2865_v47, 0.0 }
 0x39f   :  { %v1335_v41 = vadd.f32 %v1750_v42, %v2821_v35  ;;  %v1326_v52 = vpop.f32.mrb[49].mxu0  ;;  %v1236_v21 = vmul.f32 %v1178_v62, %v1108_v40  ;;  %v1199_v43 = vsel %vm1197_vm6, %v1198_v14, %v1196_v12  ;;  %v1182_v45 = vsel %vm1181_vm7, %v2810_v23, %v1180_v32 }
 0x3a0   :  { %v1327_v17 = vadd.f32 %v1326_v52, %v2823_v37  ;;  %v1367_v56 = vadd.f32 %v2753_v7, %v1238_v63  ;;  %v1751_v36 = vpop.f32.mrb[50].mxu0  ;;  %v1239_v39 = vmul.f32 %v1199_v43, %v1111_v10  ;;  %v1185_v61 = vsel %vm1183_vm8, %v1184_v59, %v1182_v45 }
 0x3a1   :  { %v2027_v3 = vpop.eup %2026  ;;  %v1338_v35 = vadd.f32 %v1751_v36, %v2829_v19  ;;  %v1359_v30 = vadd.f32 %v2755_v22, %v1236_v21  ;;  %v1329_v46 = vpop.f32.mrb[51].mxu0  ;;  %v1237_v14 = vmul.f32 %v1185_v61, %v1109_v25  ;;  %v2928_v15 = vsel %vm1391_vm5, %v1335_v41, -1e+30 }
 0x3a2   :  { %v2029_v2 = vpop.eup %2028  ;;  %v1330_v37 = vadd.f32 %v1329_v46, %v1229_v34  ;;  %v1370_v7 = vadd.f32 %v2757_v53, %v1239_v39  ;;  %1412 = vmax.xlane.f32.xlu1 %v2928_v15  ;;  %v2934_v23 = vsel %vm1391_vm5, %v1327_v17, -1e+30  ;;  %v1215_v19 = vmul.f32 %v2027_v3, %v2841_v33  ;;  %v1114_v34 = vld [vmem:[#allocation8 + $0x70] sm:$0xff] }
 0x3a3   :  { %v2031_v59 = vpop.eup %2030  ;;  %v1362_v22 = vadd.f32 %v2759_v27, %v1237_v14  ;;  %1408 = vmax.xlane.f32.xlu0 %v2934_v23  ;;  %v2941_v31 = vsel %vm1391_vm5, %v1338_v35, -1e+30  ;;  %v2945_v53 = vsel %vm1391_vm5, %v1367_v56, -1e+30  ;;  %v1201_v8 = vmul.f32 %v2029_v2, %v2852_v49 }
 0x3a4   :  { %v2033_v5 = vpop.eup %2032  ;;  %v1217_v26 = vsel %vm1216_vm9, %v2841_v33, %v1215_v19  ;;  %v1222_v27 = vmul.f32 %v2031_v59, %v2860_v1  ;;  %v1212_v4 = vand.u32 2147483648, %v2865_v47  ;;  %v1403_v52 = vsel %vm1391_vm5, %v1370_v7, -1e+30 }
 0x3a5   :  { %v1220_v16 = vsel %vm1218_vm10, %v1219_v0, %v1217_v26  ;;  %v1203_v48 = vsel %vm1202_vm11, %v2852_v49, %v1201_v8  ;;  %v1208_v20 = vmul.f32 %v2033_v5, %v2865_v47  ;;  %v1113_v0 = vld [vmem:[#allocation8 + $0x68] sm:$0xff] }
 0x3a6   :  { %1414 = vmax.xlane.f32.xlu1 %v2941_v31  ;;  %v1754_v60 = vpop.f32.mrb[52].mxu0  ;;  %v1242_v40 = vmul.f32 %v1220_v16, %v1114_v34  ;;  %v1206_v24 = vsel %vm1204_vm12, %v1205_v44, %v1203_v48  ;;  %v1224_v33 = vsel %vm1223_vm13, %v2860_v1, %v1222_v27 }
 0x3a7   :  { %v1351_v28 = vadd.f32 %v1754_v60, %v2868_v38  ;;  %v1342_v29 = vpop.f32.mrb[53].mxu0  ;;  %1428 = vmax.xlane.f32.xlu0 %v2945_v53  ;;  %v1240_v10 = vmul.f32 %v1206_v24, %v1112_v9  ;;  %v1227_v32 = vsel %vm1225_vm14, %v1226_v13, %v1224_v33  ;;  %v1210_v49 = vsel %vm1209_vm15, %v2865_v47, %v1208_v20 }
 0x3a8   :  { %v1343_v44 = vadd.f32 %v1342_v29, %v2875_v11  ;;  %v1383_v42 = vadd.f32 %v2764_v54, %v1242_v40  ;;  %v1755_v63 = vpop.f32.mrb[54].mxu0  ;;  %v1243_v62 = vmul.f32 %v1227_v32, %v1115_v50  ;;  %v1213_v38 = vsel %vm1211_vm0, %v1212_v4, %v1210_v49 }
 0x3a9   :  { %v1354_v12 = vadd.f32 %v1755_v63, %v2882_v18  ;;  %v1375_v25 = vadd.f32 %v2766_v55, %v1240_v10  ;;  %v1345_v41 = vpop.f32.mrb[55].mxu0  ;;  %v1241_v1 = vmul.f32 %v1213_v38, %v1113_v0  ;;  %v1400_v54 = vsel %vm1391_vm5, %v1359_v30, -1e+30 }
 0x3aa   :  { %v1346_v21 = vadd.f32 %v1345_v41, %v2905_v51  ;;  %v1386_v11 = vadd.f32 %v2770_v57, %v1243_v62  ;;  %1430 = vmax.xlane.f32.xlu1 %v1403_v52  ;;  %v1401_v18 = vsel %vm1391_vm5, %v1362_v22, -1e+30  ;;  %v1393_v55 = vsel %vm1391_vm5, %v1330_v37, -1e+30 }
 0x3ab   :  { %v1378_v47 = vadd.f32 %v2775_v58, %v1241_v1  ;;  %1424 = vmax.xlane.f32.xlu0 %v1400_v54  ;;  %v1399_v51 = vsel %vm1391_vm5, %v1354_v12, -1e+30  ;;  %v1398_v57 = vsel %vm1391_vm5, %v1351_v28, -1e+30  ;;  %v1396_v43 = vsel %vm1391_vm5, %v1343_v44, -1e+30 }
 0x3ac   :  { %v2998_v58 = vsel %vm1391_vm5, %v1346_v21, -1e+30  ;;  %v1404_v17 = vsel %vm1391_vm5, %v1375_v25, -1e+30  ;;  %v3012_v56 = vsel %vm1391_vm5, %v1386_v11, -1e+30 }
 0x3ad   :  { %v3005_v45 = vsel %vm1391_vm5, %v1378_v47, -1e+30  ;;  %v3017_v36 = vsel %vm1391_vm5, %v1383_v42, -1e+30 }
 0x3ae   :  { %1426 = vmax.xlane.f32.xlu1 %v1401_v18 }
 0x3af   :  { %1410 = vmax.xlane.f32.xlu0 %v1393_v55 }
 0x3b2   :  { %1422 = vmax.xlane.f32.xlu1 %v1399_v51 }
 0x3b3   :  { %1420 = vmax.xlane.f32.xlu0 %v1398_v57 }
 0x3b6   :  { %1418 = vmax.xlane.f32.xlu1 %v2998_v58 }
 0x3b7   :  { %1416 = vmax.xlane.f32.xlu0 %v1396_v43 }
 0x3ba   :  { %1434 = vmax.xlane.f32.xlu1 %v3005_v45 }
 0x3bb   :  { %1432 = vmax.xlane.f32.xlu0 %v1404_v17 }
 0x3be   :  { %1438 = vmax.xlane.f32.xlu1 %v3012_v56 }
 0x3bf   :  { %1436 = vmax.xlane.f32.xlu0 %v3017_v36 }
 0x42f   :  { %v1413_v39 = vpop.xlane.xlu1 %1412 }
 0x430   :  { %v3021_v61 = vsub.f32 %v2928_v15, %v1413_v39  ;;  %v1409_v3 = vpop.xlane.xlu0 %1408 }
 0x431   :  { %v3024_v35 = vsub.f32 %v2934_v23, %v1409_v3 }
 0x432   :  { %v1460_v30 = vmul.f32 1.442695, %v3021_v61 }
 0x433   :  { %v1456_v46 = vmul.f32 1.442695, %v3024_v35  ;;  %v1415_v14 = vpop.xlane.xlu1 %1414 }
 0x434   :  { %2034 = vpow2.f32 %v1460_v30  ;;  %v3029_v2 = vsub.f32 %v2941_v31, %v1415_v14  ;;  %v1429_v37 = vpop.xlane.xlu0 %1428 }
 0x435   :  { %v3032_v7 = vsub.f32 %v2945_v53, %v1429_v37  ;;  %2036 = vpow2.f32 %v1456_v46 }
 0x436   :  { %v1462_v15 = vmul.f32 1.442695, %v3029_v2 }
 0x437   :  { %v1431_v19 = vpop.xlane.xlu1 %1430  ;;  %v1476_v23 = vmul.f32 1.442695, %v3032_v7 }
 0x438   :  { %2038 = vpow2.f32 %v1462_v15  ;;  %v1425_v59 = vpop.xlane.xlu0 %1424  ;;  %v3038_v8 = vsub.f32 %v1403_v52, %v1431_v19 }
 0x439   :  { %v3036_v22 = vsub.f32 %v1400_v54, %v1425_v59  ;;  %2040 = vpow2.f32 %v1476_v23 }
 0x43a   :  { %v1478_v13 = vmul.f32 1.442695, %v3038_v8 }
 0x43b   :  { %v1427_v34 = vpop.xlane.xlu1 %1426  ;;  %v1472_v31 = vmul.f32 1.442695, %v3036_v22 }
 0x43c   :  { %v1411_v5 = vpop.xlane.xlu0 %1410  ;;  %v3045_v16 = vsub.f32 %v1401_v18, %v1427_v34 }
 0x43d   :  { %v3041_v26 = vsub.f32 %v1393_v55, %v1411_v5  ;;  %2042 = vpow2.f32 %v1472_v31 }
 0x43e   :  { %v2035_v53 = vpop.eup %2034  ;;  %v1474_v33 = vmul.f32 1.442695, %v3045_v16 }
 0x43f   :  { %v1458_v9 = vmul.f32 1.442695, %v3041_v26  ;;  %v1423_v27 = vpop.xlane.xlu1 %1422  ;;  %1492 = vadd.xlane.f32.xlu0 %v2035_v53  ;;  %v2037_v50 = vpop.eup %2036 }
 0x440   :  { %v1421_v48 = vpop.xlane.xlu0 %1420  ;;  %v3051_v0 = vsub.f32 %v1399_v51, %v1423_v27 }
 0x441   :  { %2044 = vpow2.f32 %v1458_v9  ;;  %v3047_v20 = vsub.f32 %v1398_v57, %v1421_v48 }
 0x442   :  { %v2039_v60 = vpop.eup %2038  ;;  %2046 = vpow2.f32 %v1478_v13  ;;  %v1470_v32 = vmul.f32 1.442695, %v3051_v0 }
 0x443   :  { %v1468_v40 = vmul.f32 1.442695, %v3047_v20  ;;  %1494 = vadd.xlane.f32.xlu1 %v2039_v60  ;;  %v1419_v24 = vpop.xlane.xlu1 %1418  ;;  %1488 = vadd.xlane.f32.xlu0 %v2037_v50  ;;  %v2041_v29 = vpop.eup %2040 }
 0x444   :  { %v1417_v4 = vpop.xlane.xlu0 %1416  ;;  %v3058_v49 = vsub.f32 %v2998_v58, %v1419_v24 }
 0x445   :  { %2048 = vpow2.f32 %v1468_v40  ;;  %v3053_v28 = vsub.f32 %v1396_v43, %v1417_v4 }
 0x446   :  { %2050 = vpow2.f32 %v1474_v33  ;;  %v1466_v25 = vmul.f32 1.442695, %v3058_v49 }
 0x447   :  { %v1464_v10 = vmul.f32 1.442695, %v3053_v28  ;;  %1508 = vadd.xlane.f32.xlu0 %v2041_v29  ;;  %v1435_v44 = vpop.xlane.xlu1 %1434  ;;  %v2043_v62 = vpop.eup %2042 }
 0x448   :  { %v1433_v42 = vpop.xlane.xlu0 %1432  ;;  %v3065_v1 = vsub.f32 %v3005_v45, %v1435_v44 }
 0x449   :  { %2052 = vpow2.f32 %v1464_v10  ;;  %v3060_v63 = vsub.f32 %v1404_v17, %v1433_v42 }
 0x44a   :  { %2054 = vpow2.f32 %v1470_v32  ;;  %v1482_v18 = vmul.f32 1.442695, %v3065_v1 }
 0x44b   :  { %v2045_v38 = vpop.eup %2044  ;;  %v1480_v12 = vmul.f32 1.442695, %v3060_v63  ;;  %1504 = vadd.xlane.f32.xlu0 %v2043_v62  ;;  %v1439_v11 = vpop.xlane.xlu1 %1438 }
 0x44c   :  { %1490 = vadd.xlane.f32.xlu1 %v2045_v38  ;;  %v1437_v41 = vpop.xlane.xlu0 %1436  ;;  %v2047_v21 = vpop.eup %2046  ;;  %v3073_v55 = vsub.f32 %v3012_v56, %v1439_v11 }
 0x44d   :  { %2056 = vpow2.f32 %v1480_v12  ;;  %v3068_v52 = vsub.f32 %v3017_v36, %v1437_v41 }
 0x44e   :  { %2058 = vpow2.f32 %v1466_v25  ;;  %v1486_v58 = vmul.f32 1.442695, %v3073_v55 }
 0x44f   :  { %v2049_v54 = vpop.eup %2048  ;;  %v1484_v47 = vmul.f32 1.442695, %v3068_v52 }
 0x450   :  { %1510 = vadd.xlane.f32.xlu1 %v2047_v21  ;;  %1500 = vadd.xlane.f32.xlu0 %v2049_v54  ;;  %v2051_v51 = vpop.eup %2050 }
 0x451   :  { %2060 = vpow2.f32 %v1484_v47 }
 0x452   :  { %2062 = vpow2.f32 %v1482_v18 }
 0x453   :  { %v2053_v57 = vpop.eup %2052  ;;  %2064 = vpow2.f32 %v1486_v58 }
 0x454   :  { %1506 = vadd.xlane.f32.xlu1 %v2051_v51  ;;  %1496 = vadd.xlane.f32.xlu0 %v2053_v57  ;;  %v2055_v43 = vpop.eup %2054 }
 0x457   :  { %v2057_v45 = vpop.eup %2056 }
 0x458   :  { %1502 = vadd.xlane.f32.xlu1 %v2055_v43  ;;  %1512 = vadd.xlane.f32.xlu0 %v2057_v45  ;;  %v2059_v17 = vpop.eup %2058 }
 0x45b   :  { %v2061_v36 = vpop.eup %2060 }
 0x45c   :  { %1498 = vadd.xlane.f32.xlu1 %v2059_v17  ;;  %1516 = vadd.xlane.f32.xlu0 %v2061_v36  ;;  %v2063_v39 = vpop.eup %2062 }
 0x45d   :  { %v2065_v56 = vpop.eup %2064 }
 0x460   :  { %1514 = vadd.xlane.f32.xlu1 %v2063_v39 }
 0x464   :  { %1518 = vadd.xlane.f32.xlu1 %v2065_v56 }
 0x4cc   :  { %v1493_v3 = vpop.xlane.xlu0 %1492 }
 0x4cd   :  { %2066 = vlog2.f32 %v1493_v3 }
 0x4d0   :  { %v1495_v30 = vpop.xlane.xlu1 %1494  ;;  %v1489_v46 = vpop.xlane.xlu0 %1488 }
 0x4d1   :  { %2068 = vlog2.f32 %v1495_v30 }
 0x4d2   :  { %2070 = vlog2.f32 %v1489_v46 }
 0x4d4   :  { %v1509_v14 = vpop.xlane.xlu0 %1508 }
 0x4d5   :  { %2072 = vlog2.f32 %v1509_v14 }
 0x4d7   :  { %v2067_v37 = vpop.eup %2066 }
 0x4d8   :  { %v1525_v15 = vmul.f32 0.6931472, %v2067_v37  ;;  %v1505_v19 = vpop.xlane.xlu0 %1504 }
 0x4d9   :  { %2074 = vlog2.f32 %v1505_v19  ;;  %v1491_v23 = vpop.xlane.xlu1 %1490 }
 0x4da   :  { %v1554_v59 = vsub.f32 %v3021_v61, %v1525_v15  ;;  %2076 = vlog2.f32 %v1491_v23 }
 0x4db   :  { %v2069_v34 = vpop.eup %2068 }
 0x4dc   :  { %v2071_v31 = vpop.eup %2070  ;;  %v1570_v5 = vsel %vm1391_vm5, %v1554_v59, 0.0  ;;  %v1527_v53 = vmul.f32 0.6931472, %v2069_v34 }
 0x4dd   :  { %1586 = vst [vmem:[#allocation13 + $0x10] sm:$0xff] %v1570_v5  ;;  %v1521_v9 = vmul.f32 0.6931472, %v2071_v31  ;;  %v1511_v27 = vpop.xlane.xlu1 %1510  ;;  %v1501_v13 = vpop.xlane.xlu0 %1500 }
 0x4de   :  { %v1555_v48 = vsub.f32 %v3029_v2, %v1527_v53  ;;  %2078 = vlog2.f32 %v1511_v27 }
 0x4df   :  { %v2073_v50 = vpop.eup %2072  ;;  %v1552_v60 = vsub.f32 %v3024_v35, %v1521_v9  ;;  %2080 = vlog2.f32 %v1501_v13 }
 0x4e0   :  { %v1571_v61 = vsel %vm1391_vm5, %v1555_v48, 0.0  ;;  %v1541_v40 = vmul.f32 0.6931472, %v2073_v50 }
 0x4e1   :  { %1587 = vst [vmem:[#allocation13 + $0x18] sm:$0xff] %v1571_v61  ;;  %v1568_v24 = vsel %vm1391_vm5, %v1552_v60, 0.0  ;;  %v1507_v33 = vpop.xlane.xlu1 %1506  ;;  %v1497_v4 = vpop.xlane.xlu0 %1496 }
 0x4e2   :  { %1584 = vst [vmem:[#allocation13] sm:$0xff] %v1568_v24  ;;  %v1562_v29 = vsub.f32 %v3032_v7, %v1541_v40  ;;  %2082 = vlog2.f32 %v1507_v33 }
 0x4e3   :  { %v2075_v2 = vpop.eup %2074  ;;  %2084 = vlog2.f32 %v1497_v4 }
 0x4e4   :  { %v2077_v10 = vpop.eup %2076  ;;  %v1578_v35 = vsel %vm1391_vm5, %v1562_v29, 0.0  ;;  %v1537_v32 = vmul.f32 0.6931472, %v2075_v2 }
 0x4e5   :  { %1594 = vst [vmem:[#allocation13 + $0x50] sm:$0xff] %v1578_v35  ;;  %v1523_v44 = vmul.f32 0.6931472, %v2077_v10  ;;  %v1503_v42 = vpop.xlane.xlu1 %1502  ;;  %v1513_v62 = vpop.xlane.xlu0 %1512 }
 0x4e6   :  { %v1560_v38 = vsub.f32 %v3036_v22, %v1537_v32  ;;  %2086 = vlog2.f32 %v1503_v42 }
 0x4e7   :  { %v1553_v12 = vsub.f32 %v3041_v26, %v1523_v44  ;;  %2088 = vlog2.f32 %v1513_v62 }
 0x4e8   :  { %v2079_v25 = vpop.eup %2078  ;;  %v1576_v7 = vsel %vm1391_vm5, %v1560_v38, 0.0 }
 0x4e9   :  { %v2081_v41 = vpop.eup %2080  ;;  %1592 = vst [vmem:[#allocation13 + $0x40] sm:$0xff] %v1576_v7  ;;  %v1569_v21 = vsel %vm1391_vm5, %v1553_v12, 0.0  ;;  %v1543_v11 = vmul.f32 0.6931472, %v2079_v25  ;;  %v1499_v54 = vpop.xlane.xlu1 %1498 }
 0x4ea   :  { %v1517_v47 = vpop.xlane.xlu0 %1516  ;;  %1585 = vst [vmem:[#allocation13 + $0x8] sm:$0xff] %v1569_v21  ;;  %v1533_v18 = vmul.f32 0.6931472, %v2081_v41  ;;  %2090 = vlog2.f32 %v1499_v54 }
 0x4eb   :  { %v1563_v22 = vsub.f32 %v3038_v8, %v1543_v11  ;;  %2092 = vlog2.f32 %v1517_v47 }
 0x4ec   :  { %v2083_v26 = vpop.eup %2082  ;;  %v1558_v51 = vsub.f32 %v3047_v20, %v1533_v18 }
 0x4ed   :  { %v2085_v57 = vpop.eup %2084  ;;  %v1579_v58 = vsel %vm1391_vm5, %v1563_v22, 0.0  ;;  %v1539_v43 = vmul.f32 0.6931472, %v2083_v26  ;;  %v1515_v45 = vpop.xlane.xlu1 %1514 }
 0x4ee   :  { %1595 = vst [vmem:[#allocation13 + $0x58] sm:$0xff] %v1579_v58  ;;  %v1574_v17 = vsel %vm1391_vm5, %v1558_v51, 0.0  ;;  %v1529_v36 = vmul.f32 0.6931472, %v2085_v57  ;;  %2094 = vlog2.f32 %v1515_v45 }
 0x4ef   :  { %1590 = vst [vmem:[#allocation13 + $0x30] sm:$0xff] %v1574_v17  ;;  %v1561_v39 = vsub.f32 %v3045_v16, %v1539_v43 }
 0x4f0   :  { %v2087_v8 = vpop.eup %2086  ;;  %v1556_v56 = vsub.f32 %v3053_v28, %v1529_v36 }
 0x4f1   :  { %v2089_v3 = vpop.eup %2088  ;;  %v1577_v20 = vsel %vm1391_vm5, %v1561_v39, 0.0  ;;  %v1535_v30 = vmul.f32 0.6931472, %v2087_v8  ;;  %v1519_v46 = vpop.xlane.xlu1 %1518 }
 0x4f2   :  { %1593 = vst [vmem:[#allocation13 + $0x48] sm:$0xff] %v1577_v20  ;;  %v1572_v14 = vsel %vm1391_vm5, %v1556_v56, 0.0  ;;  %v1545_v37 = vmul.f32 0.6931472, %v2089_v3  ;;  %2096 = vlog2.f32 %v1519_v46 }
 0x4f3   :  { %1588 = vst [vmem:[#allocation13 + $0x20] sm:$0xff] %v1572_v14  ;;  %v1559_v15 = vsub.f32 %v3051_v0, %v1535_v30 }
 0x4f4   :  { %v2091_v19 = vpop.eup %2090  ;;  %v1564_v16 = vsub.f32 %v3060_v63, %v1545_v37 }
 0x4f5   :  { %v2093_v23 = vpop.eup %2092  ;;  %v1575_v28 = vsel %vm1391_vm5, %v1559_v15, 0.0  ;;  %v1531_v59 = vmul.f32 0.6931472, %v2091_v19 }
 0x4f6   :  { %1591 = vst [vmem:[#allocation13 + $0x38] sm:$0xff] %v1575_v28  ;;  %v1580_v34 = vsel %vm1391_vm5, %v1564_v16, 0.0  ;;  %v1549_v31 = vmul.f32 0.6931472, %v2093_v23 }
 0x4f7   :  { %1596 = vst [vmem:[#allocation13 + $0x60] sm:$0xff] %v1580_v34  ;;  %v1557_v5 = vsub.f32 %v3058_v49, %v1531_v59 }
 0x4f8   :  { %v2095_v53 = vpop.eup %2094  ;;  %v1566_v9 = vsub.f32 %v3068_v52, %v1549_v31 }
 0x4f9   :  { %v1573_v0 = vsel %vm1391_vm5, %v1557_v5, 0.0  ;;  %v1547_v63 = vmul.f32 0.6931472, %v2095_v53 }
 0x4fa   :  { %1589 = vst [vmem:[#allocation13 + $0x28] sm:$0xff] %v1573_v0  ;;  %v1582_v27 = vsel %vm1391_vm5, %v1566_v9, 0.0 }
 0x4fb   :  { %1598 = vst [vmem:[#allocation13 + $0x70] sm:$0xff] %v1582_v27  ;;  %v1565_v13 = vsub.f32 %v3065_v1, %v1547_v63 }
 0x4fc   :  { %v2097_v48 = vpop.eup %2096 }
 0x4fd   :  { %v1581_v50 = vsel %vm1391_vm5, %v1565_v13, 0.0  ;;  %v1551_v60 = vmul.f32 0.6931472, %v2097_v48 }
 0x4fe   :  { %1597 = vst [vmem:[#allocation13 + $0x68] sm:$0xff] %v1581_v50 }
 0x4ff   :  { %v1567_v49 = vsub.f32 %v3073_v55, %v1551_v60 }
 0x501   :  { %v1583_v52 = vsel %vm1391_vm5, %v1567_v49, 0.0 }
 0x502   :  { %1599 = vst [vmem:[#allocation13 + $0x78] sm:$0xff] %v1583_v52 }
 0x503   :  { %2241 = shalt.err (!%p2238_p10)
}
 0x504   :  { %s2242_s3 = scalar_lea.hbm %s3147_s8, 2048 }
 0x505   :  { %p2243_p11 = scmp.ne.s32.totalorder %s3147_s8, %s2242_s3  ;;  %p2246_p12 = scmp.lt.u32.totalorder %s2242_s3, %s3147_s8 }
 0x507   :  { %p2248_p13 = pnand %p2246_p12, %p2243_p11 }
 0x509   :  { %2251 = shalt.err (!%p2248_p13)
}
 0x50a   :  { %1611 = dma.vmem_to_hbm [thread:$0]  %s1606_s18, 2048, %s3147_s8, [#allocation4], %s2267_s28, %s2267_s28, %s2268_s9  }
 0x50b   :  { %2260 = dma.done.wait [#allocation4], 2048  }
 0x50c   :  { %2261 = vsyncadd [#allocation4], 4294965248 }
 0x50d   :  { %1615 = vsyncpa [#allocation3], 1 }
 0x50e   :  { %1616 = vsyncpa [#allocation6], 1 }
 0x50f   :  { %1617 = vsyncpa [#allocation9], 1 }
 0x510   :  { %1618 = vsyncpa [#allocation12], 1 }
 0x511   :  { %1619 = vsyncpa [#allocation4], 1 }

</bundles_post_ra>
